<compile_context>
chip_gen: v7x
topology: tpu7x:2x2x1
jax: 0.10.0
libtpu: 0.0.40
codegen_flags: <defaults>
</compile_context>

<pallas_src>
import jax
import jax.numpy as jnp
from jax import lax
from jax.experimental import pallas as pl
from jax.experimental.pallas import tpu as pltpu


# --------------------------- fused kernel ------------------------------------

def _make_fused_kernel(num_enc_layers, num_dec_layers, batch, seq_len, hidden,
                       out_dim):
    L_enc, L_dec = num_enc_layers, num_dec_layers
    B, T, H, O = batch, seq_len, hidden, out_dim
    G = 4 * H

    def kernel(*refs):
        idx = 0
        x_ref = refs[idx]; idx += 1                      # (B*T, D) batch-major rows
        enc_w = refs[idx:idx + 3 * L_enc]; idx += 3 * L_enc
        dec_w = refs[idx:idx + 3 * L_dec]; idx += 3 * L_dec
        fcw_ref = refs[idx]; idx += 1                    # (H, O)
        fcb_ref = refs[idx]; idx += 1                    # (1, O)
        out_ref = refs[idx]; idx += 1                    # (L_enc, B, O)
        seq_a, seq_b, hn_scr = refs[idx:idx + 3]         # VMEM scratch

        def run_layer(get_xg, whh, n, n_steps, seq_ref):
            """Serial LSTM recurrence; input projection already hoisted into
            get_xg(t) -> (n, 4H).  Writes the hidden sequence (time-major) into
            seq_ref if given; returns the final hidden state (n, H)."""
            h = jnp.zeros((n, H), jnp.float32)
            c = jnp.zeros((n, H), jnp.float32)
            for t in range(n_steps):                      # small T: unrolled
                gates = get_xg(t) + jnp.dot(
                    h, whh, preferred_element_type=jnp.float32)
                # One EUP pass per nonlinearity over the full lane-dense 4H vreg,
                # then slice the gates (PyTorch order: i, f, g, o).
                sig = jax.nn.sigmoid(gates)
                tah = jnp.tanh(gates)
                i = sig[:, 0 * H:1 * H]
                f = sig[:, 1 * H:2 * H]
                g = tah[:, 2 * H:3 * H]
                o = sig[:, 3 * H:4 * H]
                c = f * c + i * g
                h = o * jnp.tanh(c)
                if seq_ref is not None:
                    seq_ref[t * n:(t + 1) * n, :] = h
            return h

        def project(x2d, wih_ref, b_ref):
            # Hoisted input projection: one MXU matmul per layer.
            return (jnp.dot(x2d, wih_ref[...],
                            preferred_element_type=jnp.float32) + b_ref[...])

        # ------------------------------ encoder ------------------------------
        # Layer 0 input is batch-major (rows (b, t)); its hoisted projection is
        # sliced per step via [:, t, :].  Deeper layers consume the time-major
        # hidden sequence written to VMEM scratch.
        prev_seq = None
        for l in range(L_enc):
            wih_ref, whh_ref, b_ref = enc_w[3 * l:3 * l + 3]
            whh = whh_ref[...]
            if l == 0:
                xg3 = project(x_ref[...], wih_ref, b_ref).reshape(B, T, G)
                get_xg = lambda t, xg3=xg3: xg3[:, t, :]
            else:
                cur = prev_seq[pl.ds(0, T * B), :]        # time-major (T*B, H)
                xg = project(cur, wih_ref, b_ref)
                get_xg = lambda t, xg=xg: xg[t * B:(t + 1) * B, :]
            # The last encoder layer's sequence is never read -> skip writing it.
            write_seq = (seq_a, seq_b)[l % 2] if l < L_enc - 1 else None
            h_last = run_layer(get_xg, whh, B, T, write_seq)
            # h_n staged in VMEM, laid out batch-major for the decoder: row
            # l*B + b == h_n[l, b]  (decoder batch = l, decoder time = b).
            hn_scr[l * B:(l + 1) * B, :] = h_last
            prev_seq = write_seq

        # ------------------------------ decoder ------------------------------
        n_dec, T_dec = L_enc, B                           # batch = L, seq = B
        hn = hn_scr[...]                                  # (L_enc*B, H)
        for l in range(L_dec):
            wih_ref, whh_ref, b_ref = dec_w[3 * l:3 * l + 3]
            whh = whh_ref[...]
            if l == 0:
                xg3 = project(hn, wih_ref, b_ref).reshape(n_dec, T_dec, G)
                get_xg = lambda t, xg3=xg3: xg3[:, t, :]
            else:
                cur = prev_seq[pl.ds(0, T_dec * n_dec), :]
                xg = project(cur, wih_ref, b_ref)
                get_xg = lambda t, xg=xg: xg[t * n_dec:(t + 1) * n_dec, :]
            write_seq = (seq_a, seq_b)[l % 2]
            run_layer(get_xg, whh, n_dec, T_dec, write_seq)
            prev_seq = write_seq

        # ------------------------------ fc head ------------------------------
        # Fused while the decoder output is still resident in VMEM.
        # TODO(synk): lane-pad O to 128 for unmasked stores at production sizes.
        dec_out = prev_seq[pl.ds(0, T_dec * n_dec), :]    # rows (t'=b, l)
        out2 = (jnp.dot(dec_out, fcw_ref[...],
                        preferred_element_type=jnp.float32) + fcb_ref[...])
        out3 = out2.reshape(T_dec, n_dec, O)              # (B, L_enc, O)
        for l in range(n_dec):
            out_ref[l] = out3[:, l, :]                    # out[l, b] = out3[b, l]

    return kernel


# --------------------------- wrappers ----------------------------------------

def pack_params(params):
    """One-time (init-time) packing: pre-transpose weights, fuse biases.
    Keep this OUT of the jitted forward."""
    def pack_lstm(layers):
        return [(jnp.transpose(w_ih),                     # (Din, 4H)
                 jnp.transpose(w_hh),                     # (H, 4H)
                 (b_ih + b_hh).reshape(1, -1))            # (1, 4H)
                for (w_ih, w_hh, b_ih, b_hh) in layers]
    return {
        "encoder": pack_lstm(params["encoder"]),
        "decoder": pack_lstm(params["decoder"]),
        "fc_w": jnp.transpose(params["fc_w"]),            # (H, O)
        "fc_b": params["fc_b"].reshape(1, -1),            # (1, O)
    }


def lstm_encoder_decoder_forward(x, packed):
    """x: (B, T, D) batch-first.  Returns fc(decoder(encoder h_n)): (L, B, O)."""
    B, T, D = x.shape
    enc, dec = packed["encoder"], packed["decoder"]
    L_enc, L_dec = len(enc), len(dec)
    H = enc[0][1].shape[0]                                # whh_T is (H, 4H)
    O = packed["fc_w"].shape[1]

    args = [x.reshape(B * T, D)]                          # contiguous reshape: no
    for w in enc:                                         # transpose, no HBM pass
        args += list(w)
    for w in dec:
        args += list(w)
    args += [packed["fc_w"], packed["fc_b"]]

    max_rows = max(T * B, L_enc * B)
    return pl.pallas_call(
        _make_fused_kernel(L_enc, L_dec, B, T, H, O),
        out_shape=jax.ShapeDtypeStruct((L_enc, B, O), jnp.float32),
        scratch_shapes=[
            pltpu.VMEM((max_rows, H), jnp.float32),       # hidden-seq ping
            pltpu.VMEM((max_rows, H), jnp.float32),       # hidden-seq pong
            pltpu.VMEM((L_enc * B, H), jnp.float32),      # h_n staging
        ],
    )(*args)


# --------------------------- pure-JAX reference ------------------------------

def _lstm_layer_ref(x_tbd, w_ih, w_hh, b_ih, b_hh):
    _, B, _ = x_tbd.shape
    H = w_hh.shape[1]

    def step(carry, x_t):
        h, c = carry
        gates = x_t @ w_ih.T + h @ w_hh.T + b_ih + b_hh
        i = jax.nn.sigmoid(gates[:, :H])
        f = jax.nn.sigmoid(gates[:, H:2 * H])
        g = jnp.tanh(gates[:, 2 * H:3 * H])
        o = jax.nn.sigmoid(gates[:, 3 * H:4 * H])
        c = f * c + i * g
        h = o * jnp.tanh(c)
        return (h, c), h

    init = (jnp.zeros((B, H), jnp.float32), jnp.zeros((B, H), jnp.float32))
    _, hs = lax.scan(step, init, x_tbd)
    return hs


def _forward_ref(x, params):
    def run(x_bsd, layers):
        h_seq = jnp.transpose(x_bsd, (1, 0, 2))
        finals = []
        for (w_ih, w_hh, b_ih, b_hh) in layers:
            h_seq = _lstm_layer_ref(h_seq, w_ih, w_hh, b_ih, b_hh)
            finals.append(h_seq[-1])
        return jnp.transpose(h_seq, (1, 0, 2)), jnp.stack(finals, 0)

    _, h_n = run(x, params["encoder"])
    dec_out, _ = run(h_n, params["decoder"])
    return dec_out @ params["fc_w"].T + params["fc_b"]


# --------------------------- params ------------------------------------------

def init_lstm_params(key, input_dim, hidden_dim, num_layers):
    bound = 1.0 / float(hidden_dim) ** 0.5
    layers = []
    for l in range(num_layers):
        in_d = input_dim if l == 0 else hidden_dim
        key, k1, k2, k3, k4 = jax.random.split(key, 5)
        w_ih = jax.random.uniform(k1, (4 * hidden_dim, in_d), jnp.float32,
                                  -bound, bound)
        w_hh = jax.random.uniform(k2, (4 * hidden_dim, hidden_dim), jnp.float32,
                                  -bound, bound)
        b_ih = jax.random.uniform(k3, (4 * hidden_dim,), jnp.float32, -bound, bound)
        b_hh = jax.random.uniform(k4, (4 * hidden_dim,), jnp.float32, -bound, bound)
        layers.append((w_ih, w_hh, b_ih, b_hh))
    return layers, key


# --------------------------- main ---------------------------------------------

if __name__ == "__main__":
    input_dim, hidden_dim, num_layers, output_dim = 4, 32, 2, 8
    batch, seq = 2, 8

    key = jax.random.PRNGKey(0)
    key, kx = jax.random.split(key)
    x = jax.random.normal(kx, (batch, seq, input_dim), jnp.float32)

    enc_params, key = init_lstm_params(key, input_dim, hidden_dim, num_layers)
    dec_params, key = init_lstm_params(key, hidden_dim, hidden_dim, num_layers)
    key, kw, kb = jax.random.split(key, 3)
    bound = 1.0 / float(hidden_dim) ** 0.5
    params = {
        "encoder": enc_params,
        "decoder": dec_params,
        "fc_w": jax.random.uniform(kw, (output_dim, hidden_dim), jnp.float32,
                                   -bound, bound),
        "fc_b": jax.random.uniform(kb, (output_dim,), jnp.float32, -bound, bound),
    }

    # Weight packing happens ONCE here, outside the jitted forward.
    packed = jax.tree_util.tree_map(lambda a: a, pack_params(params))

    fwd = jax.jit(lstm_encoder_decoder_forward)
    out = jax.block_until_ready(fwd(x, packed))

    ref = jax.block_until_ready(_forward_ref(x, params))
    assert out.shape == (num_layers, batch, output_dim), out.shape
    assert jnp.allclose(out, ref, atol=1e-5, rtol=1e-5), "mismatch vs reference"

    print("KERNEL_OK")
</pallas_src>

<mosaic_0001>
module attributes {stable_mosaic.version = 11 : i64} {
  func.func @kernel(%arg0: memref<16x4xf32, #tpu.memory_space<vmem>>, %arg1: memref<4x128xf32, #tpu.memory_space<vmem>>, %arg2: memref<32x128xf32, #tpu.memory_space<vmem>>, %arg3: memref<1x128xf32, #tpu.memory_space<vmem>>, %arg4: memref<32x128xf32, #tpu.memory_space<vmem>>, %arg5: memref<32x128xf32, #tpu.memory_space<vmem>>, %arg6: memref<1x128xf32, #tpu.memory_space<vmem>>, %arg7: memref<32x128xf32, #tpu.memory_space<vmem>>, %arg8: memref<32x128xf32, #tpu.memory_space<vmem>>, %arg9: memref<1x128xf32, #tpu.memory_space<vmem>>, %arg10: memref<32x128xf32, #tpu.memory_space<vmem>>, %arg11: memref<32x128xf32, #tpu.memory_space<vmem>>, %arg12: memref<1x128xf32, #tpu.memory_space<vmem>>, %arg13: memref<32x8xf32, #tpu.memory_space<vmem>>, %arg14: memref<1x8xf32, #tpu.memory_space<vmem>>, %arg15: memref<2x2x8xf32, #tpu.memory_space<vmem>>, %arg16: memref<16x32xf32, #tpu.memory_space<vmem>>, %arg17: memref<16x32xf32, #tpu.memory_space<vmem>>, %arg18: memref<4x32xf32, #tpu.memory_space<vmem>>) attributes {dimension_semantics = [], scalar_prefetch = 0 : i64, scratch_operands = 3 : i64, tpu.core_type = #tpu.core_type<tc>} {
    %c0 = arith.constant 0 : index
    %c0_0 = arith.constant 0 : index
    %0 = vector.load %arg2[%c0, %c0_0] : memref<32x128xf32, #tpu.memory_space<vmem>>, vector<32x128xf32>
    %c0_1 = arith.constant 0 : index
    %c0_2 = arith.constant 0 : index
    %1 = vector.load %arg0[%c0_1, %c0_2] : memref<16x4xf32, #tpu.memory_space<vmem>>, vector<16x4xf32>
    %c0_3 = arith.constant 0 : index
    %c0_4 = arith.constant 0 : index
    %2 = vector.load %arg1[%c0_3, %c0_4] : memref<4x128xf32, #tpu.memory_space<vmem>>, vector<4x128xf32>
    %cst = arith.constant dense<0.000000e+00> : vector<16x128xf32>
    %3 = tpu.matmul %1, %2, %cst {dimension_numbers = #tpu.dot_dimension_numbers<[1], [0], [0], [1], [0, 0, 1, 1], [], []>} : vector<16x4xf32>, vector<4x128xf32>, vector<16x128xf32> -> vector<16x128xf32>
    %c0_5 = arith.constant 0 : index
    %c0_6 = arith.constant 0 : index
    %4 = vector.load %arg3[%c0_5, %c0_6] : memref<1x128xf32, #tpu.memory_space<vmem>>, vector<1x128xf32>
    %5 = vector.broadcast %4 : vector<1x128xf32> to vector<16x128xf32>
    %6 = arith.addf %3, %5 : vector<16x128xf32>
    %7 = vector.shape_cast %6 : vector<16x128xf32> to vector<2x8x128xf32>
    %cst_7 = arith.constant 0.000000e+00 : f32
    %8 = vector.broadcast %cst_7 : f32 to vector<2x32xf32>
    %cst_8 = arith.constant 0.000000e+00 : f32
    %9 = vector.broadcast %cst_8 : f32 to vector<2x32xf32>
    %10 = vector.extract_strided_slice %7 {offsets = [0, 0, 0], sizes = [2, 1, 128], strides = [1, 1, 1]} : vector<2x8x128xf32> to vector<2x1x128xf32>
    %11 = vector.shape_cast %10 : vector<2x1x128xf32> to vector<2x128xf32>
    %cst_9 = arith.constant dense<0.000000e+00> : vector<2x128xf32>
    %12 = tpu.matmul %8, %0, %cst_9 {dimension_numbers = #tpu.dot_dimension_numbers<[1], [0], [0], [1], [0, 0, 1, 1], [], []>} : vector<2x32xf32>, vector<32x128xf32>, vector<2x128xf32> -> vector<2x128xf32>
    %13 = arith.addf %11, %12 : vector<2x128xf32>
    %14 = arith.negf %13 : vector<2x128xf32>
    %15 = math.exp %14 : vector<2x128xf32>
    %cst_10 = arith.constant 1.000000e+00 : f32
    %16 = vector.broadcast %cst_10 : f32 to vector<2x128xf32>
    %17 = arith.addf %16, %15 : vector<2x128xf32>
    %18 = arith.divf %16, %17 : vector<2x128xf32>
    %19 = math.tanh %13 : vector<2x128xf32>
    %20 = vector.extract_strided_slice %18 {offsets = [0, 0], sizes = [2, 32], strides = [1, 1]} : vector<2x128xf32> to vector<2x32xf32>
    %21 = vector.extract_strided_slice %18 {offsets = [0, 32], sizes = [2, 32], strides = [1, 1]} : vector<2x128xf32> to vector<2x32xf32>
    %22 = vector.extract_strided_slice %19 {offsets = [0, 64], sizes = [2, 32], strides = [1, 1]} : vector<2x128xf32> to vector<2x32xf32>
    %23 = vector.extract_strided_slice %18 {offsets = [0, 96], sizes = [2, 32], strides = [1, 1]} : vector<2x128xf32> to vector<2x32xf32>
    %24 = arith.mulf %21, %9 : vector<2x32xf32>
    %25 = arith.mulf %20, %22 : vector<2x32xf32>
    %26 = arith.addf %24, %25 : vector<2x32xf32>
    %27 = math.tanh %26 : vector<2x32xf32>
    %28 = arith.mulf %23, %27 : vector<2x32xf32>
    %c0_11 = arith.constant 0 : index
    %c0_12 = arith.constant 0 : index
    %29 = vector.load %arg16[%c0_11, %c0_12] : memref<16x32xf32, #tpu.memory_space<vmem>>, vector<2x32xf32>
    tpu.vector_store %arg16[%c0_11, %c0_12], %28 {strides = array<i32>} : memref<16x32xf32, #tpu.memory_space<vmem>>, vector<2x32xf32>,
    %30 = vector.extract_strided_slice %7 {offsets = [0, 1, 0], sizes = [2, 1, 128], strides = [1, 1, 1]} : vector<2x8x128xf32> to vector<2x1x128xf32>
    %31 = vector.shape_cast %30 : vector<2x1x128xf32> to vector<2x128xf32>
    %cst_13 = arith.constant dense<0.000000e+00> : vector<2x128xf32>
    %32 = tpu.matmul %28, %0, %cst_13 {dimension_numbers = #tpu.dot_dimension_numbers<[1], [0], [0], [1], [0, 0, 1, 1], [], []>} : vector<2x32xf32>, vector<32x128xf32>, vector<2x128xf32> -> vector<2x128xf32>
    %33 = arith.addf %31, %32 : vector<2x128xf32>
    %34 = arith.negf %33 : vector<2x128xf32>
    %35 = math.exp %34 : vector<2x128xf32>
    %cst_14 = arith.constant 1.000000e+00 : f32
    %36 = vector.broadcast %cst_14 : f32 to vector<2x128xf32>
    %37 = arith.addf %36, %35 : vector<2x128xf32>
    %38 = arith.divf %36, %37 : vector<2x128xf32>
    %39 = math.tanh %33 : vector<2x128xf32>
    %40 = vector.extract_strided_slice %38 {offsets = [0, 0], sizes = [2, 32], strides = [1, 1]} : vector<2x128xf32> to vector<2x32xf32>
    %41 = vector.extract_strided_slice %38 {offsets = [0, 32], sizes = [2, 32], strides = [1, 1]} : vector<2x128xf32> to vector<2x32xf32>
    %42 = vector.extract_strided_slice %39 {offsets = [0, 64], sizes = [2, 32], strides = [1, 1]} : vector<2x128xf32> to vector<2x32xf32>
    %43 = vector.extract_strided_slice %38 {offsets = [0, 96], sizes = [2, 32], strides = [1, 1]} : vector<2x128xf32> to vector<2x32xf32>
    %44 = arith.mulf %41, %26 : vector<2x32xf32>
    %45 = arith.mulf %40, %42 : vector<2x32xf32>
    %46 = arith.addf %44, %45 : vector<2x32xf32>
    %47 = math.tanh %46 : vector<2x32xf32>
    %48 = arith.mulf %43, %47 : vector<2x32xf32>
    %c2 = arith.constant 2 : index
    %c0_15 = arith.constant 0 : index
    %49 = vector.load %arg16[%c2, %c0_15] : memref<16x32xf32, #tpu.memory_space<vmem>>, vector<2x32xf32>
    tpu.vector_store %arg16[%c2, %c0_15], %48 {strides = array<i32>} : memref<16x32xf32, #tpu.memory_space<vmem>>, vector<2x32xf32>,
    %50 = vector.extract_strided_slice %7 {offsets = [0, 2, 0], sizes = [2, 1, 128], strides = [1, 1, 1]} : vector<2x8x128xf32> to vector<2x1x128xf32>
    %51 = vector.shape_cast %50 : vector<2x1x128xf32> to vector<2x128xf32>
    %cst_16 = arith.constant dense<0.000000e+00> : vector<2x128xf32>
    %52 = tpu.matmul %48, %0, %cst_16 {dimension_numbers = #tpu.dot_dimension_numbers<[1], [0], [0], [1], [0, 0, 1, 1], [], []>} : vector<2x32xf32>, vector<32x128xf32>, vector<2x128xf32> -> vector<2x128xf32>
    %53 = arith.addf %51, %52 : vector<2x128xf32>
    %54 = arith.negf %53 : vector<2x128xf32>
    %55 = math.exp %54 : vector<2x128xf32>
    %cst_17 = arith.constant 1.000000e+00 : f32
    %56 = vector.broadcast %cst_17 : f32 to vector<2x128xf32>
    %57 = arith.addf %56, %55 : vector<2x128xf32>
    %58 = arith.divf %56, %57 : vector<2x128xf32>
    %59 = math.tanh %53 : vector<2x128xf32>
    %60 = vector.extract_strided_slice %58 {offsets = [0, 0], sizes = [2, 32], strides = [1, 1]} : vector<2x128xf32> to vector<2x32xf32>
    %61 = vector.extract_strided_slice %58 {offsets = [0, 32], sizes = [2, 32], strides = [1, 1]} : vector<2x128xf32> to vector<2x32xf32>
    %62 = vector.extract_strided_slice %59 {offsets = [0, 64], sizes = [2, 32], strides = [1, 1]} : vector<2x128xf32> to vector<2x32xf32>
    %63 = vector.extract_strided_slice %58 {offsets = [0, 96], sizes = [2, 32], strides = [1, 1]} : vector<2x128xf32> to vector<2x32xf32>
    %64 = arith.mulf %61, %46 : vector<2x32xf32>
    %65 = arith.mulf %60, %62 : vector<2x32xf32>
    %66 = arith.addf %64, %65 : vector<2x32xf32>
    %67 = math.tanh %66 : vector<2x32xf32>
    %68 = arith.mulf %63, %67 : vector<2x32xf32>
    %c4 = arith.constant 4 : index
    %c0_18 = arith.constant 0 : index
    %69 = vector.load %arg16[%c4, %c0_18] : memref<16x32xf32, #tpu.memory_space<vmem>>, vector<2x32xf32>
    tpu.vector_store %arg16[%c4, %c0_18], %68 {strides = array<i32>} : memref<16x32xf32, #tpu.memory_space<vmem>>, vector<2x32xf32>,
    %70 = vector.extract_strided_slice %7 {offsets = [0, 3, 0], sizes = [2, 1, 128], strides = [1, 1, 1]} : vector<2x8x128xf32> to vector<2x1x128xf32>
    %71 = vector.shape_cast %70 : vector<2x1x128xf32> to vector<2x128xf32>
    %cst_19 = arith.constant dense<0.000000e+00> : vector<2x128xf32>
    %72 = tpu.matmul %68, %0, %cst_19 {dimension_numbers = #tpu.dot_dimension_numbers<[1], [0], [0], [1], [0, 0, 1, 1], [], []>} : vector<2x32xf32>, vector<32x128xf32>, vector<2x128xf32> -> vector<2x128xf32>
    %73 = arith.addf %71, %72 : vector<2x128xf32>
    %74 = arith.negf %73 : vector<2x128xf32>
    %75 = math.exp %74 : vector<2x128xf32>
    %cst_20 = arith.constant 1.000000e+00 : f32
    %76 = vector.broadcast %cst_20 : f32 to vector<2x128xf32>
    %77 = arith.addf %76, %75 : vector<2x128xf32>
    %78 = arith.divf %76, %77 : vector<2x128xf32>
    %79 = math.tanh %73 : vector<2x128xf32>
    %80 = vector.extract_strided_slice %78 {offsets = [0, 0], sizes = [2, 32], strides = [1, 1]} : vector<2x128xf32> to vector<2x32xf32>
    %81 = vector.extract_strided_slice %78 {offsets = [0, 32], sizes = [2, 32], strides = [1, 1]} : vector<2x128xf32> to vector<2x32xf32>
    %82 = vector.extract_strided_slice %79 {offsets = [0, 64], sizes = [2, 32], strides = [1, 1]} : vector<2x128xf32> to vector<2x32xf32>
    %83 = vector.extract_strided_slice %78 {offsets = [0, 96], sizes = [2, 32], strides = [1, 1]} : vector<2x128xf32> to vector<2x32xf32>
    %84 = arith.mulf %81, %66 : vector<2x32xf32>
    %85 = arith.mulf %80, %82 : vector<2x32xf32>
    %86 = arith.addf %84, %85 : vector<2x32xf32>
    %87 = math.tanh %86 : vector<2x32xf32>
    %88 = arith.mulf %83, %87 : vector<2x32xf32>
    %c6 = arith.constant 6 : index
    %c0_21 = arith.constant 0 : index
    %89 = vector.load %arg16[%c6, %c0_21] : memref<16x32xf32, #tpu.memory_space<vmem>>, vector<2x32xf32>
    tpu.vector_store %arg16[%c6, %c0_21], %88 {strides = array<i32>} : memref<16x32xf32, #tpu.memory_space<vmem>>, vector<2x32xf32>,
    %90 = vector.extract_strided_slice %7 {offsets = [0, 4, 0], sizes = [2, 1, 128], strides = [1, 1, 1]} : vector<2x8x128xf32> to vector<2x1x128xf32>
    %91 = vector.shape_cast %90 : vector<2x1x128xf32> to vector<2x128xf32>
    %cst_22 = arith.constant dense<0.000000e+00> : vector<2x128xf32>
    %92 = tpu.matmul %88, %0, %cst_22 {dimension_numbers = #tpu.dot_dimension_numbers<[1], [0], [0], [1], [0, 0, 1, 1], [], []>} : vector<2x32xf32>, vector<32x128xf32>, vector<2x128xf32> -> vector<2x128xf32>
    %93 = arith.addf %91, %92 : vector<2x128xf32>
    %94 = arith.negf %93 : vector<2x128xf32>
    %95 = math.exp %94 : vector<2x128xf32>
    %cst_23 = arith.constant 1.000000e+00 : f32
    %96 = vector.broadcast %cst_23 : f32 to vector<2x128xf32>
    %97 = arith.addf %96, %95 : vector<2x128xf32>
    %98 = arith.divf %96, %97 : vector<2x128xf32>
    %99 = math.tanh %93 : vector<2x128xf32>
    %100 = vector.extract_strided_slice %98 {offsets = [0, 0], sizes = [2, 32], strides = [1, 1]} : vector<2x128xf32> to vector<2x32xf32>
    %101 = vector.extract_strided_slice %98 {offsets = [0, 32], sizes = [2, 32], strides = [1, 1]} : vector<2x128xf32> to vector<2x32xf32>
    %102 = vector.extract_strided_slice %99 {offsets = [0, 64], sizes = [2, 32], strides = [1, 1]} : vector<2x128xf32> to vector<2x32xf32>
    %103 = vector.extract_strided_slice %98 {offsets = [0, 96], sizes = [2, 32], strides = [1, 1]} : vector<2x128xf32> to vector<2x32xf32>
    %104 = arith.mulf %101, %86 : vector<2x32xf32>
    %105 = arith.mulf %100, %102 : vector<2x32xf32>
    %106 = arith.addf %104, %105 : vector<2x32xf32>
    %107 = math.tanh %106 : vector<2x32xf32>
    %108 = arith.mulf %103, %107 : vector<2x32xf32>
    %c8 = arith.constant 8 : index
    %c0_24 = arith.constant 0 : index
    %109 = vector.load %arg16[%c8, %c0_24] : memref<16x32xf32, #tpu.memory_space<vmem>>, vector<2x32xf32>
    tpu.vector_store %arg16[%c8, %c0_24], %108 {strides = array<i32>} : memref<16x32xf32, #tpu.memory_space<vmem>>, vector<2x32xf32>,
    %110 = vector.extract_strided_slice %7 {offsets = [0, 5, 0], sizes = [2, 1, 128], strides = [1, 1, 1]} : vector<2x8x128xf32> to vector<2x1x128xf32>
    %111 = vector.shape_cast %110 : vector<2x1x128xf32> to vector<2x128xf32>
    %cst_25 = arith.constant dense<0.000000e+00> : vector<2x128xf32>
    %112 = tpu.matmul %108, %0, %cst_25 {dimension_numbers = #tpu.dot_dimension_numbers<[1], [0], [0], [1], [0, 0, 1, 1], [], []>} : vector<2x32xf32>, vector<32x128xf32>, vector<2x128xf32> -> vector<2x128xf32>
    %113 = arith.addf %111, %112 : vector<2x128xf32>
    %114 = arith.negf %113 : vector<2x128xf32>
    %115 = math.exp %114 : vector<2x128xf32>
    %cst_26 = arith.constant 1.000000e+00 : f32
    %116 = vector.broadcast %cst_26 : f32 to vector<2x128xf32>
    %117 = arith.addf %116, %115 : vector<2x128xf32>
    %118 = arith.divf %116, %117 : vector<2x128xf32>
    %119 = math.tanh %113 : vector<2x128xf32>
    %120 = vector.extract_strided_slice %118 {offsets = [0, 0], sizes = [2, 32], strides = [1, 1]} : vector<2x128xf32> to vector<2x32xf32>
    %121 = vector.extract_strided_slice %118 {offsets = [0, 32], sizes = [2, 32], strides = [1, 1]} : vector<2x128xf32> to vector<2x32xf32>
    %122 = vector.extract_strided_slice %119 {offsets = [0, 64], sizes = [2, 32], strides = [1, 1]} : vector<2x128xf32> to vector<2x32xf32>
    %123 = vector.extract_strided_slice %118 {offsets = [0, 96], sizes = [2, 32], strides = [1, 1]} : vector<2x128xf32> to vector<2x32xf32>
    %124 = arith.mulf %121, %106 : vector<2x32xf32>
    %125 = arith.mulf %120, %122 : vector<2x32xf32>
    %126 = arith.addf %124, %125 : vector<2x32xf32>
    %127 = math.tanh %126 : vector<2x32xf32>
    %128 = arith.mulf %123, %127 : vector<2x32xf32>
    %c10 = arith.constant 10 : index
    %c0_27 = arith.constant 0 : index
    %129 = vector.load %arg16[%c10, %c0_27] : memref<16x32xf32, #tpu.memory_space<vmem>>, vector<2x32xf32>
    tpu.vector_store %arg16[%c10, %c0_27], %128 {strides = array<i32>} : memref<16x32xf32, #tpu.memory_space<vmem>>, vector<2x32xf32>,
    %130 = vector.extract_strided_slice %7 {offsets = [0, 6, 0], sizes = [2, 1, 128], strides = [1, 1, 1]} : vector<2x8x128xf32> to vector<2x1x128xf32>
    %131 = vector.shape_cast %130 : vector<2x1x128xf32> to vector<2x128xf32>
    %cst_28 = arith.constant dense<0.000000e+00> : vector<2x128xf32>
    %132 = tpu.matmul %128, %0, %cst_28 {dimension_numbers = #tpu.dot_dimension_numbers<[1], [0], [0], [1], [0, 0, 1, 1], [], []>} : vector<2x32xf32>, vector<32x128xf32>, vector<2x128xf32> -> vector<2x128xf32>
    %133 = arith.addf %131, %132 : vector<2x128xf32>
    %134 = arith.negf %133 : vector<2x128xf32>
    %135 = math.exp %134 : vector<2x128xf32>
    %cst_29 = arith.constant 1.000000e+00 : f32
    %136 = vector.broadcast %cst_29 : f32 to vector<2x128xf32>
    %137 = arith.addf %136, %135 : vector<2x128xf32>
    %138 = arith.divf %136, %137 : vector<2x128xf32>
    %139 = math.tanh %133 : vector<2x128xf32>
    %140 = vector.extract_strided_slice %138 {offsets = [0, 0], sizes = [2, 32], strides = [1, 1]} : vector<2x128xf32> to vector<2x32xf32>
    %141 = vector.extract_strided_slice %138 {offsets = [0, 32], sizes = [2, 32], strides = [1, 1]} : vector<2x128xf32> to vector<2x32xf32>
    %142 = vector.extract_strided_slice %139 {offsets = [0, 64], sizes = [2, 32], strides = [1, 1]} : vector<2x128xf32> to vector<2x32xf32>
    %143 = vector.extract_strided_slice %138 {offsets = [0, 96], sizes = [2, 32], strides = [1, 1]} : vector<2x128xf32> to vector<2x32xf32>
    %144 = arith.mulf %141, %126 : vector<2x32xf32>
    %145 = arith.mulf %140, %142 : vector<2x32xf32>
    %146 = arith.addf %144, %145 : vector<2x32xf32>
    %147 = math.tanh %146 : vector<2x32xf32>
    %148 = arith.mulf %143, %147 : vector<2x32xf32>
    %c12 = arith.constant 12 : index
    %c0_30 = arith.constant 0 : index
    %149 = vector.load %arg16[%c12, %c0_30] : memref<16x32xf32, #tpu.memory_space<vmem>>, vector<2x32xf32>
    tpu.vector_store %arg16[%c12, %c0_30], %148 {strides = array<i32>} : memref<16x32xf32, #tpu.memory_space<vmem>>, vector<2x32xf32>,
    %150 = vector.extract_strided_slice %7 {offsets = [0, 7, 0], sizes = [2, 1, 128], strides = [1, 1, 1]} : vector<2x8x128xf32> to vector<2x1x128xf32>
    %151 = vector.shape_cast %150 : vector<2x1x128xf32> to vector<2x128xf32>
    %cst_31 = arith.constant dense<0.000000e+00> : vector<2x128xf32>
    %152 = tpu.matmul %148, %0, %cst_31 {dimension_numbers = #tpu.dot_dimension_numbers<[1], [0], [0], [1], [0, 0, 1, 1], [], []>} : vector<2x32xf32>, vector<32x128xf32>, vector<2x128xf32> -> vector<2x128xf32>
    %153 = arith.addf %151, %152 : vector<2x128xf32>
    %154 = arith.negf %153 : vector<2x128xf32>
    %155 = math.exp %154 : vector<2x128xf32>
    %cst_32 = arith.constant 1.000000e+00 : f32
    %156 = vector.broadcast %cst_32 : f32 to vector<2x128xf32>
    %157 = arith.addf %156, %155 : vector<2x128xf32>
    %158 = arith.divf %156, %157 : vector<2x128xf32>
    %159 = math.tanh %153 : vector<2x128xf32>
    %160 = vector.extract_strided_slice %158 {offsets = [0, 0], sizes = [2, 32], strides = [1, 1]} : vector<2x128xf32> to vector<2x32xf32>
    %161 = vector.extract_strided_slice %158 {offsets = [0, 32], sizes = [2, 32], strides = [1, 1]} : vector<2x128xf32> to vector<2x32xf32>
    %162 = vector.extract_strided_slice %159 {offsets = [0, 64], sizes = [2, 32], strides = [1, 1]} : vector<2x128xf32> to vector<2x32xf32>
    %163 = vector.extract_strided_slice %158 {offsets = [0, 96], sizes = [2, 32], strides = [1, 1]} : vector<2x128xf32> to vector<2x32xf32>
    %164 = arith.mulf %161, %146 : vector<2x32xf32>
    %165 = arith.mulf %160, %162 : vector<2x32xf32>
    %166 = arith.addf %164, %165 : vector<2x32xf32>
    %167 = math.tanh %166 : vector<2x32xf32>
    %168 = arith.mulf %163, %167 : vector<2x32xf32>
    %c14 = arith.constant 14 : index
    %c0_33 = arith.constant 0 : index
    %169 = vector.load %arg16[%c14, %c0_33] : memref<16x32xf32, #tpu.memory_space<vmem>>, vector<2x32xf32>
    tpu.vector_store %arg16[%c14, %c0_33], %168 {strides = array<i32>} : memref<16x32xf32, #tpu.memory_space<vmem>>, vector<2x32xf32>,
    %c0_34 = arith.constant 0 : index
    %c0_35 = arith.constant 0 : index
    %170 = vector.load %arg18[%c0_34, %c0_35] : memref<4x32xf32, #tpu.memory_space<vmem>>, vector<2x32xf32>
    tpu.vector_store %arg18[%c0_34, %c0_35], %168 {strides = array<i32>} : memref<4x32xf32, #tpu.memory_space<vmem>>, vector<2x32xf32>,
    %c0_36 = arith.constant 0 : index
    %c0_37 = arith.constant 0 : index
    %171 = vector.load %arg5[%c0_36, %c0_37] : memref<32x128xf32, #tpu.memory_space<vmem>>, vector<32x128xf32>
    %c0_38 = arith.constant 0 : index
    %c0_39 = arith.constant 0 : index
    %172 = vector.load %arg16[%c0_38, %c0_39] : memref<16x32xf32, #tpu.memory_space<vmem>>, vector<16x32xf32>
    %c0_40 = arith.constant 0 : index
    %c0_41 = arith.constant 0 : index
    %173 = vector.load %arg4[%c0_40, %c0_41] : memref<32x128xf32, #tpu.memory_space<vmem>>, vector<32x128xf32>
    %cst_42 = arith.constant dense<0.000000e+00> : vector<16x128xf32>
    %174 = tpu.matmul %172, %173, %cst_42 {dimension_numbers = #tpu.dot_dimension_numbers<[1], [0], [0], [1], [0, 0, 1, 1], [], []>} : vector<16x32xf32>, vector<32x128xf32>, vector<16x128xf32> -> vector<16x128xf32>
    %c0_43 = arith.constant 0 : index
    %c0_44 = arith.constant 0 : index
    %175 = vector.load %arg6[%c0_43, %c0_44] : memref<1x128xf32, #tpu.memory_space<vmem>>, vector<1x128xf32>
    %176 = vector.broadcast %175 : vector<1x128xf32> to vector<16x128xf32>
    %177 = arith.addf %174, %176 : vector<16x128xf32>
    %cst_45 = arith.constant 0.000000e+00 : f32
    %178 = vector.broadcast %cst_45 : f32 to vector<2x32xf32>
    %cst_46 = arith.constant 0.000000e+00 : f32
    %179 = vector.broadcast %cst_46 : f32 to vector<2x32xf32>
    %180 = vector.extract_strided_slice %177 {offsets = [0, 0], sizes = [2, 128], strides = [1, 1]} : vector<16x128xf32> to vector<2x128xf32>
    %cst_47 = arith.constant dense<0.000000e+00> : vector<2x128xf32>
    %181 = tpu.matmul %178, %171, %cst_47 {dimension_numbers = #tpu.dot_dimension_numbers<[1], [0], [0], [1], [0, 0, 1, 1], [], []>} : vector<2x32xf32>, vector<32x128xf32>, vector<2x128xf32> -> vector<2x128xf32>
    %182 = arith.addf %180, %181 : vector<2x128xf32>
    %183 = arith.negf %182 : vector<2x128xf32>
    %184 = math.exp %183 : vector<2x128xf32>
    %cst_48 = arith.constant 1.000000e+00 : f32
    %185 = vector.broadcast %cst_48 : f32 to vector<2x128xf32>
    %186 = arith.addf %185, %184 : vector<2x128xf32>
    %187 = arith.divf %185, %186 : vector<2x128xf32>
    %188 = math.tanh %182 : vector<2x128xf32>
    %189 = vector.extract_strided_slice %187 {offsets = [0, 0], sizes = [2, 32], strides = [1, 1]} : vector<2x128xf32> to vector<2x32xf32>
    %190 = vector.extract_strided_slice %187 {offsets = [0, 32], sizes = [2, 32], strides = [1, 1]} : vector<2x128xf32> to vector<2x32xf32>
    %191 = vector.extract_strided_slice %188 {offsets = [0, 64], sizes = [2, 32], strides = [1, 1]} : vector<2x128xf32> to vector<2x32xf32>
    %192 = vector.extract_strided_slice %187 {offsets = [0, 96], sizes = [2, 32], strides = [1, 1]} : vector<2x128xf32> to vector<2x32xf32>
    %193 = arith.mulf %190, %179 : vector<2x32xf32>
    %194 = arith.mulf %189, %191 : vector<2x32xf32>
    %195 = arith.addf %193, %194 : vector<2x32xf32>
    %196 = math.tanh %195 : vector<2x32xf32>
    %197 = arith.mulf %192, %196 : vector<2x32xf32>
    %198 = vector.extract_strided_slice %177 {offsets = [2, 0], sizes = [2, 128], strides = [1, 1]} : vector<16x128xf32> to vector<2x128xf32>
    %cst_49 = arith.constant dense<0.000000e+00> : vector<2x128xf32>
    %199 = tpu.matmul %197, %171, %cst_49 {dimension_numbers = #tpu.dot_dimension_numbers<[1], [0], [0], [1], [0, 0, 1, 1], [], []>} : vector<2x32xf32>, vector<32x128xf32>, vector<2x128xf32> -> vector<2x128xf32>
    %200 = arith.addf %198, %199 : vector<2x128xf32>
    %201 = arith.negf %200 : vector<2x128xf32>
    %202 = math.exp %201 : vector<2x128xf32>
    %cst_50 = arith.constant 1.000000e+00 : f32
    %203 = vector.broadcast %cst_50 : f32 to vector<2x128xf32>
    %204 = arith.addf %203, %202 : vector<2x128xf32>
    %205 = arith.divf %203, %204 : vector<2x128xf32>
    %206 = math.tanh %200 : vector<2x128xf32>
    %207 = vector.extract_strided_slice %205 {offsets = [0, 0], sizes = [2, 32], strides = [1, 1]} : vector<2x128xf32> to vector<2x32xf32>
    %208 = vector.extract_strided_slice %205 {offsets = [0, 32], sizes = [2, 32], strides = [1, 1]} : vector<2x128xf32> to vector<2x32xf32>
    %209 = vector.extract_strided_slice %206 {offsets = [0, 64], sizes = [2, 32], strides = [1, 1]} : vector<2x128xf32> to vector<2x32xf32>
    %210 = vector.extract_strided_slice %205 {offsets = [0, 96], sizes = [2, 32], strides = [1, 1]} : vector<2x128xf32> to vector<2x32xf32>
    %211 = arith.mulf %208, %195 : vector<2x32xf32>
    %212 = arith.mulf %207, %209 : vector<2x32xf32>
    %213 = arith.addf %211, %212 : vector<2x32xf32>
    %214 = math.tanh %213 : vector<2x32xf32>
    %215 = arith.mulf %210, %214 : vector<2x32xf32>
    %216 = vector.extract_strided_slice %177 {offsets = [4, 0], sizes = [2, 128], strides = [1, 1]} : vector<16x128xf32> to vector<2x128xf32>
    %cst_51 = arith.constant dense<0.000000e+00> : vector<2x128xf32>
    %217 = tpu.matmul %215, %171, %cst_51 {dimension_numbers = #tpu.dot_dimension_numbers<[1], [0], [0], [1], [0, 0, 1, 1], [], []>} : vector<2x32xf32>, vector<32x128xf32>, vector<2x128xf32> -> vector<2x128xf32>
    %218 = arith.addf %216, %217 : vector<2x128xf32>
    %219 = arith.negf %218 : vector<2x128xf32>
    %220 = math.exp %219 : vector<2x128xf32>
    %cst_52 = arith.constant 1.000000e+00 : f32
    %221 = vector.broadcast %cst_52 : f32 to vector<2x128xf32>
    %222 = arith.addf %221, %220 : vector<2x128xf32>
    %223 = arith.divf %221, %222 : vector<2x128xf32>
    %224 = math.tanh %218 : vector<2x128xf32>
    %225 = vector.extract_strided_slice %223 {offsets = [0, 0], sizes = [2, 32], strides = [1, 1]} : vector<2x128xf32> to vector<2x32xf32>
    %226 = vector.extract_strided_slice %223 {offsets = [0, 32], sizes = [2, 32], strides = [1, 1]} : vector<2x128xf32> to vector<2x32xf32>
    %227 = vector.extract_strided_slice %224 {offsets = [0, 64], sizes = [2, 32], strides = [1, 1]} : vector<2x128xf32> to vector<2x32xf32>
    %228 = vector.extract_strided_slice %223 {offsets = [0, 96], sizes = [2, 32], strides = [1, 1]} : vector<2x128xf32> to vector<2x32xf32>
    %229 = arith.mulf %226, %213 : vector<2x32xf32>
    %230 = arith.mulf %225, %227 : vector<2x32xf32>
    %231 = arith.addf %229, %230 : vector<2x32xf32>
    %232 = math.tanh %231 : vector<2x32xf32>
    %233 = arith.mulf %228, %232 : vector<2x32xf32>
    %234 = vector.extract_strided_slice %177 {offsets = [6, 0], sizes = [2, 128], strides = [1, 1]} : vector<16x128xf32> to vector<2x128xf32>
    %cst_53 = arith.constant dense<0.000000e+00> : vector<2x128xf32>
    %235 = tpu.matmul %233, %171, %cst_53 {dimension_numbers = #tpu.dot_dimension_numbers<[1], [0], [0], [1], [0, 0, 1, 1], [], []>} : vector<2x32xf32>, vector<32x128xf32>, vector<2x128xf32> -> vector<2x128xf32>
    %236 = arith.addf %234, %235 : vector<2x128xf32>
    %237 = arith.negf %236 : vector<2x128xf32>
    %238 = math.exp %237 : vector<2x128xf32>
    %cst_54 = arith.constant 1.000000e+00 : f32
    %239 = vector.broadcast %cst_54 : f32 to vector<2x128xf32>
    %240 = arith.addf %239, %238 : vector<2x128xf32>
    %241 = arith.divf %239, %240 : vector<2x128xf32>
    %242 = math.tanh %236 : vector<2x128xf32>
    %243 = vector.extract_strided_slice %241 {offsets = [0, 0], sizes = [2, 32], strides = [1, 1]} : vector<2x128xf32> to vector<2x32xf32>
    %244 = vector.extract_strided_slice %241 {offsets = [0, 32], sizes = [2, 32], strides = [1, 1]} : vector<2x128xf32> to vector<2x32xf32>
    %245 = vector.extract_strided_slice %242 {offsets = [0, 64], sizes = [2, 32], strides = [1, 1]} : vector<2x128xf32> to vector<2x32xf32>
    %246 = vector.extract_strided_slice %241 {offsets = [0, 96], sizes = [2, 32], strides = [1, 1]} : vector<2x128xf32> to vector<2x32xf32>
    %247 = arith.mulf %244, %231 : vector<2x32xf32>
    %248 = arith.mulf %243, %245 : vector<2x32xf32>
    %249 = arith.addf %247, %248 : vector<2x32xf32>
    %250 = math.tanh %249 : vector<2x32xf32>
    %251 = arith.mulf %246, %250 : vector<2x32xf32>
    %252 = vector.extract_strided_slice %177 {offsets = [8, 0], sizes = [2, 128], strides = [1, 1]} : vector<16x128xf32> to vector<2x128xf32>
    %cst_55 = arith.constant dense<0.000000e+00> : vector<2x128xf32>
    %253 = tpu.matmul %251, %171, %cst_55 {dimension_numbers = #tpu.dot_dimension_numbers<[1], [0], [0], [1], [0, 0, 1, 1], [], []>} : vector<2x32xf32>, vector<32x128xf32>, vector<2x128xf32> -> vector<2x128xf32>
    %254 = arith.addf %252, %253 : vector<2x128xf32>
    %255 = arith.negf %254 : vector<2x128xf32>
    %256 = math.exp %255 : vector<2x128xf32>
    %cst_56 = arith.constant 1.000000e+00 : f32
    %257 = vector.broadcast %cst_56 : f32 to vector<2x128xf32>
    %258 = arith.addf %257, %256 : vector<2x128xf32>
    %259 = arith.divf %257, %258 : vector<2x128xf32>
    %260 = math.tanh %254 : vector<2x128xf32>
    %261 = vector.extract_strided_slice %259 {offsets = [0, 0], sizes = [2, 32], strides = [1, 1]} : vector<2x128xf32> to vector<2x32xf32>
    %262 = vector.extract_strided_slice %259 {offsets = [0, 32], sizes = [2, 32], strides = [1, 1]} : vector<2x128xf32> to vector<2x32xf32>
    %263 = vector.extract_strided_slice %260 {offsets = [0, 64], sizes = [2, 32], strides = [1, 1]} : vector<2x128xf32> to vector<2x32xf32>
    %264 = vector.extract_strided_slice %259 {offsets = [0, 96], sizes = [2, 32], strides = [1, 1]} : vector<2x128xf32> to vector<2x32xf32>
    %265 = arith.mulf %262, %249 : vector<2x32xf32>
    %266 = arith.mulf %261, %263 : vector<2x32xf32>
    %267 = arith.addf %265, %266 : vector<2x32xf32>
    %268 = math.tanh %267 : vector<2x32xf32>
    %269 = arith.mulf %264, %268 : vector<2x32xf32>
    %270 = vector.extract_strided_slice %177 {offsets = [10, 0], sizes = [2, 128], strides = [1, 1]} : vector<16x128xf32> to vector<2x128xf32>
    %cst_57 = arith.constant dense<0.000000e+00> : vector<2x128xf32>
    %271 = tpu.matmul %269, %171, %cst_57 {dimension_numbers = #tpu.dot_dimension_numbers<[1], [0], [0], [1], [0, 0, 1, 1], [], []>} : vector<2x32xf32>, vector<32x128xf32>, vector<2x128xf32> -> vector<2x128xf32>
    %272 = arith.addf %270, %271 : vector<2x128xf32>
    %273 = arith.negf %272 : vector<2x128xf32>
    %274 = math.exp %273 : vector<2x128xf32>
    %cst_58 = arith.constant 1.000000e+00 : f32
    %275 = vector.broadcast %cst_58 : f32 to vector<2x128xf32>
    %276 = arith.addf %275, %274 : vector<2x128xf32>
    %277 = arith.divf %275, %276 : vector<2x128xf32>
    %278 = math.tanh %272 : vector<2x128xf32>
    %279 = vector.extract_strided_slice %277 {offsets = [0, 0], sizes = [2, 32], strides = [1, 1]} : vector<2x128xf32> to vector<2x32xf32>
    %280 = vector.extract_strided_slice %277 {offsets = [0, 32], sizes = [2, 32], strides = [1, 1]} : vector<2x128xf32> to vector<2x32xf32>
    %281 = vector.extract_strided_slice %278 {offsets = [0, 64], sizes = [2, 32], strides = [1, 1]} : vector<2x128xf32> to vector<2x32xf32>
    %282 = vector.extract_strided_slice %277 {offsets = [0, 96], sizes = [2, 32], strides = [1, 1]} : vector<2x128xf32> to vector<2x32xf32>
    %283 = arith.mulf %280, %267 : vector<2x32xf32>
    %284 = arith.mulf %279, %281 : vector<2x32xf32>
    %285 = arith.addf %283, %284 : vector<2x32xf32>
    %286 = math.tanh %285 : vector<2x32xf32>
    %287 = arith.mulf %282, %286 : vector<2x32xf32>
    %288 = vector.extract_strided_slice %177 {offsets = [12, 0], sizes = [2, 128], strides = [1, 1]} : vector<16x128xf32> to vector<2x128xf32>
    %cst_59 = arith.constant dense<0.000000e+00> : vector<2x128xf32>
    %289 = tpu.matmul %287, %171, %cst_59 {dimension_numbers = #tpu.dot_dimension_numbers<[1], [0], [0], [1], [0, 0, 1, 1], [], []>} : vector<2x32xf32>, vector<32x128xf32>, vector<2x128xf32> -> vector<2x128xf32>
    %290 = arith.addf %288, %289 : vector<2x128xf32>
    %291 = arith.negf %290 : vector<2x128xf32>
    %292 = math.exp %291 : vector<2x128xf32>
    %cst_60 = arith.constant 1.000000e+00 : f32
    %293 = vector.broadcast %cst_60 : f32 to vector<2x128xf32>
    %294 = arith.addf %293, %292 : vector<2x128xf32>
    %295 = arith.divf %293, %294 : vector<2x128xf32>
    %296 = math.tanh %290 : vector<2x128xf32>
    %297 = vector.extract_strided_slice %295 {offsets = [0, 0], sizes = [2, 32], strides = [1, 1]} : vector<2x128xf32> to vector<2x32xf32>
    %298 = vector.extract_strided_slice %295 {offsets = [0, 32], sizes = [2, 32], strides = [1, 1]} : vector<2x128xf32> to vector<2x32xf32>
    %299 = vector.extract_strided_slice %296 {offsets = [0, 64], sizes = [2, 32], strides = [1, 1]} : vector<2x128xf32> to vector<2x32xf32>
    %300 = vector.extract_strided_slice %295 {offsets = [0, 96], sizes = [2, 32], strides = [1, 1]} : vector<2x128xf32> to vector<2x32xf32>
    %301 = arith.mulf %298, %285 : vector<2x32xf32>
    %302 = arith.mulf %297, %299 : vector<2x32xf32>
    %303 = arith.addf %301, %302 : vector<2x32xf32>
    %304 = math.tanh %303 : vector<2x32xf32>
    %305 = arith.mulf %300, %304 : vector<2x32xf32>
    %306 = vector.extract_strided_slice %177 {offsets = [14, 0], sizes = [2, 128], strides = [1, 1]} : vector<16x128xf32> to vector<2x128xf32>
    %cst_61 = arith.constant dense<0.000000e+00> : vector<2x128xf32>
    %307 = tpu.matmul %305, %171, %cst_61 {dimension_numbers = #tpu.dot_dimension_numbers<[1], [0], [0], [1], [0, 0, 1, 1], [], []>} : vector<2x32xf32>, vector<32x128xf32>, vector<2x128xf32> -> vector<2x128xf32>
    %308 = arith.addf %306, %307 : vector<2x128xf32>
    %309 = arith.negf %308 : vector<2x128xf32>
    %310 = math.exp %309 : vector<2x128xf32>
    %cst_62 = arith.constant 1.000000e+00 : f32
    %311 = vector.broadcast %cst_62 : f32 to vector<2x128xf32>
    %312 = arith.addf %311, %310 : vector<2x128xf32>
    %313 = arith.divf %311, %312 : vector<2x128xf32>
    %314 = math.tanh %308 : vector<2x128xf32>
    %315 = vector.extract_strided_slice %313 {offsets = [0, 0], sizes = [2, 32], strides = [1, 1]} : vector<2x128xf32> to vector<2x32xf32>
    %316 = vector.extract_strided_slice %313 {offsets = [0, 32], sizes = [2, 32], strides = [1, 1]} : vector<2x128xf32> to vector<2x32xf32>
    %317 = vector.extract_strided_slice %314 {offsets = [0, 64], sizes = [2, 32], strides = [1, 1]} : vector<2x128xf32> to vector<2x32xf32>
    %318 = vector.extract_strided_slice %313 {offsets = [0, 96], sizes = [2, 32], strides = [1, 1]} : vector<2x128xf32> to vector<2x32xf32>
    %319 = arith.mulf %316, %303 : vector<2x32xf32>
    %320 = arith.mulf %315, %317 : vector<2x32xf32>
    %321 = arith.addf %319, %320 : vector<2x32xf32>
    %322 = math.tanh %321 : vector<2x32xf32>
    %323 = arith.mulf %318, %322 : vector<2x32xf32>
    %c2_63 = arith.constant 2 : index
    %c0_64 = arith.constant 0 : index
    %324 = vector.load %arg18[%c2_63, %c0_64] : memref<4x32xf32, #tpu.memory_space<vmem>>, vector<2x32xf32>
    tpu.vector_store %arg18[%c2_63, %c0_64], %323 {strides = array<i32>} : memref<4x32xf32, #tpu.memory_space<vmem>>, vector<2x32xf32>,
    %c0_65 = arith.constant 0 : index
    %c0_66 = arith.constant 0 : index
    %325 = vector.load %arg18[%c0_65, %c0_66] : memref<4x32xf32, #tpu.memory_space<vmem>>, vector<4x32xf32>
    %c0_67 = arith.constant 0 : index
    %c0_68 = arith.constant 0 : index
    %326 = vector.load %arg8[%c0_67, %c0_68] : memref<32x128xf32, #tpu.memory_space<vmem>>, vector<32x128xf32>
    %c0_69 = arith.constant 0 : index
    %c0_70 = arith.constant 0 : index
    %327 = vector.load %arg7[%c0_69, %c0_70] : memref<32x128xf32, #tpu.memory_space<vmem>>, vector<32x128xf32>
    %cst_71 = arith.constant dense<0.000000e+00> : vector<4x128xf32>
    %328 = tpu.matmul %325, %327, %cst_71 {dimension_numbers = #tpu.dot_dimension_numbers<[1], [0], [0], [1], [0, 0, 1, 1], [], []>} : vector<4x32xf32>, vector<32x128xf32>, vector<4x128xf32> -> vector<4x128xf32>
    %c0_72 = arith.constant 0 : index
    %c0_73 = arith.constant 0 : index
    %329 = vector.load %arg9[%c0_72, %c0_73] : memref<1x128xf32, #tpu.memory_space<vmem>>, vector<1x128xf32>
    %330 = vector.broadcast %329 : vector<1x128xf32> to vector<4x128xf32>
    %331 = arith.addf %328, %330 : vector<4x128xf32>
    %332 = vector.shape_cast %331 : vector<4x128xf32> to vector<2x2x128xf32>
    %cst_74 = arith.constant 0.000000e+00 : f32
    %333 = vector.broadcast %cst_74 : f32 to vector<2x32xf32>
    %cst_75 = arith.constant 0.000000e+00 : f32
    %334 = vector.broadcast %cst_75 : f32 to vector<2x32xf32>
    %335 = vector.extract_strided_slice %332 {offsets = [0, 0, 0], sizes = [2, 1, 128], strides = [1, 1, 1]} : vector<2x2x128xf32> to vector<2x1x128xf32>
    %336 = vector.shape_cast %335 : vector<2x1x128xf32> to vector<2x128xf32>
    %cst_76 = arith.constant dense<0.000000e+00> : vector<2x128xf32>
    %337 = tpu.matmul %333, %326, %cst_76 {dimension_numbers = #tpu.dot_dimension_numbers<[1], [0], [0], [1], [0, 0, 1, 1], [], []>} : vector<2x32xf32>, vector<32x128xf32>, vector<2x128xf32> -> vector<2x128xf32>
    %338 = arith.addf %336, %337 : vector<2x128xf32>
    %339 = arith.negf %338 : vector<2x128xf32>
    %340 = math.exp %339 : vector<2x128xf32>
    %cst_77 = arith.constant 1.000000e+00 : f32
    %341 = vector.broadcast %cst_77 : f32 to vector<2x128xf32>
    %342 = arith.addf %341, %340 : vector<2x128xf32>
    %343 = arith.divf %341, %342 : vector<2x128xf32>
    %344 = math.tanh %338 : vector<2x128xf32>
    %345 = vector.extract_strided_slice %343 {offsets = [0, 0], sizes = [2, 32], strides = [1, 1]} : vector<2x128xf32> to vector<2x32xf32>
    %346 = vector.extract_strided_slice %343 {offsets = [0, 32], sizes = [2, 32], strides = [1, 1]} : vector<2x128xf32> to vector<2x32xf32>
    %347 = vector.extract_strided_slice %344 {offsets = [0, 64], sizes = [2, 32], strides = [1, 1]} : vector<2x128xf32> to vector<2x32xf32>
    %348 = vector.extract_strided_slice %343 {offsets = [0, 96], sizes = [2, 32], strides = [1, 1]} : vector<2x128xf32> to vector<2x32xf32>
    %349 = arith.mulf %346, %334 : vector<2x32xf32>
    %350 = arith.mulf %345, %347 : vector<2x32xf32>
    %351 = arith.addf %349, %350 : vector<2x32xf32>
    %352 = math.tanh %351 : vector<2x32xf32>
    %353 = arith.mulf %348, %352 : vector<2x32xf32>
    %c0_78 = arith.constant 0 : index
    %c0_79 = arith.constant 0 : index
    %354 = vector.load %arg16[%c0_78, %c0_79] : memref<16x32xf32, #tpu.memory_space<vmem>>, vector<2x32xf32>
    tpu.vector_store %arg16[%c0_78, %c0_79], %353 {strides = array<i32>} : memref<16x32xf32, #tpu.memory_space<vmem>>, vector<2x32xf32>,
    %355 = vector.extract_strided_slice %332 {offsets = [0, 1, 0], sizes = [2, 1, 128], strides = [1, 1, 1]} : vector<2x2x128xf32> to vector<2x1x128xf32>
    %356 = vector.shape_cast %355 : vector<2x1x128xf32> to vector<2x128xf32>
    %cst_80 = arith.constant dense<0.000000e+00> : vector<2x128xf32>
    %357 = tpu.matmul %353, %326, %cst_80 {dimension_numbers = #tpu.dot_dimension_numbers<[1], [0], [0], [1], [0, 0, 1, 1], [], []>} : vector<2x32xf32>, vector<32x128xf32>, vector<2x128xf32> -> vector<2x128xf32>
    %358 = arith.addf %356, %357 : vector<2x128xf32>
    %359 = arith.negf %358 : vector<2x128xf32>
    %360 = math.exp %359 : vector<2x128xf32>
    %cst_81 = arith.constant 1.000000e+00 : f32
    %361 = vector.broadcast %cst_81 : f32 to vector<2x128xf32>
    %362 = arith.addf %361, %360 : vector<2x128xf32>
    %363 = arith.divf %361, %362 : vector<2x128xf32>
    %364 = math.tanh %358 : vector<2x128xf32>
    %365 = vector.extract_strided_slice %363 {offsets = [0, 0], sizes = [2, 32], strides = [1, 1]} : vector<2x128xf32> to vector<2x32xf32>
    %366 = vector.extract_strided_slice %363 {offsets = [0, 32], sizes = [2, 32], strides = [1, 1]} : vector<2x128xf32> to vector<2x32xf32>
    %367 = vector.extract_strided_slice %364 {offsets = [0, 64], sizes = [2, 32], strides = [1, 1]} : vector<2x128xf32> to vector<2x32xf32>
    %368 = vector.extract_strided_slice %363 {offsets = [0, 96], sizes = [2, 32], strides = [1, 1]} : vector<2x128xf32> to vector<2x32xf32>
    %369 = arith.mulf %366, %351 : vector<2x32xf32>
    %370 = arith.mulf %365, %367 : vector<2x32xf32>
    %371 = arith.addf %369, %370 : vector<2x32xf32>
    %372 = math.tanh %371 : vector<2x32xf32>
    %373 = arith.mulf %368, %372 : vector<2x32xf32>
    %c2_82 = arith.constant 2 : index
    %c0_83 = arith.constant 0 : index
    %374 = vector.load %arg16[%c2_82, %c0_83] : memref<16x32xf32, #tpu.memory_space<vmem>>, vector<2x32xf32>
    tpu.vector_store %arg16[%c2_82, %c0_83], %373 {strides = array<i32>} : memref<16x32xf32, #tpu.memory_space<vmem>>, vector<2x32xf32>,
    %c0_84 = arith.constant 0 : index
    %c0_85 = arith.constant 0 : index
    %375 = vector.load %arg11[%c0_84, %c0_85] : memref<32x128xf32, #tpu.memory_space<vmem>>, vector<32x128xf32>
    %c0_86 = arith.constant 0 : index
    %c0_87 = arith.constant 0 : index
    %376 = vector.load %arg16[%c0_86, %c0_87] : memref<16x32xf32, #tpu.memory_space<vmem>>, vector<4x32xf32>
    %c0_88 = arith.constant 0 : index
    %c0_89 = arith.constant 0 : index
    %377 = vector.load %arg10[%c0_88, %c0_89] : memref<32x128xf32, #tpu.memory_space<vmem>>, vector<32x128xf32>
    %cst_90 = arith.constant dense<0.000000e+00> : vector<4x128xf32>
    %378 = tpu.matmul %376, %377, %cst_90 {dimension_numbers = #tpu.dot_dimension_numbers<[1], [0], [0], [1], [0, 0, 1, 1], [], []>} : vector<4x32xf32>, vector<32x128xf32>, vector<4x128xf32> -> vector<4x128xf32>
    %c0_91 = arith.constant 0 : index
    %c0_92 = arith.constant 0 : index
    %379 = vector.load %arg12[%c0_91, %c0_92] : memref<1x128xf32, #tpu.memory_space<vmem>>, vector<1x128xf32>
    %380 = vector.broadcast %379 : vector<1x128xf32> to vector<4x128xf32>
    %381 = arith.addf %378, %380 : vector<4x128xf32>
    %cst_93 = arith.constant 0.000000e+00 : f32
    %382 = vector.broadcast %cst_93 : f32 to vector<2x32xf32>
    %cst_94 = arith.constant 0.000000e+00 : f32
    %383 = vector.broadcast %cst_94 : f32 to vector<2x32xf32>
    %384 = vector.extract_strided_slice %381 {offsets = [0, 0], sizes = [2, 128], strides = [1, 1]} : vector<4x128xf32> to vector<2x128xf32>
    %cst_95 = arith.constant dense<0.000000e+00> : vector<2x128xf32>
    %385 = tpu.matmul %382, %375, %cst_95 {dimension_numbers = #tpu.dot_dimension_numbers<[1], [0], [0], [1], [0, 0, 1, 1], [], []>} : vector<2x32xf32>, vector<32x128xf32>, vector<2x128xf32> -> vector<2x128xf32>
    %386 = arith.addf %384, %385 : vector<2x128xf32>
    %387 = arith.negf %386 : vector<2x128xf32>
    %388 = math.exp %387 : vector<2x128xf32>
    %cst_96 = arith.constant 1.000000e+00 : f32
    %389 = vector.broadcast %cst_96 : f32 to vector<2x128xf32>
    %390 = arith.addf %389, %388 : vector<2x128xf32>
    %391 = arith.divf %389, %390 : vector<2x128xf32>
    %392 = math.tanh %386 : vector<2x128xf32>
    %393 = vector.extract_strided_slice %391 {offsets = [0, 0], sizes = [2, 32], strides = [1, 1]} : vector<2x128xf32> to vector<2x32xf32>
    %394 = vector.extract_strided_slice %391 {offsets = [0, 32], sizes = [2, 32], strides = [1, 1]} : vector<2x128xf32> to vector<2x32xf32>
    %395 = vector.extract_strided_slice %392 {offsets = [0, 64], sizes = [2, 32], strides = [1, 1]} : vector<2x128xf32> to vector<2x32xf32>
    %396 = vector.extract_strided_slice %391 {offsets = [0, 96], sizes = [2, 32], strides = [1, 1]} : vector<2x128xf32> to vector<2x32xf32>
    %397 = arith.mulf %394, %383 : vector<2x32xf32>
    %398 = arith.mulf %393, %395 : vector<2x32xf32>
    %399 = arith.addf %397, %398 : vector<2x32xf32>
    %400 = math.tanh %399 : vector<2x32xf32>
    %401 = arith.mulf %396, %400 : vector<2x32xf32>
    %c0_97 = arith.constant 0 : index
    %c0_98 = arith.constant 0 : index
    %402 = vector.load %arg17[%c0_97, %c0_98] : memref<16x32xf32, #tpu.memory_space<vmem>>, vector<2x32xf32>
    tpu.vector_store %arg17[%c0_97, %c0_98], %401 {strides = array<i32>} : memref<16x32xf32, #tpu.memory_space<vmem>>, vector<2x32xf32>,
    %403 = vector.extract_strided_slice %381 {offsets = [2, 0], sizes = [2, 128], strides = [1, 1]} : vector<4x128xf32> to vector<2x128xf32>
    %cst_99 = arith.constant dense<0.000000e+00> : vector<2x128xf32>
    %404 = tpu.matmul %401, %375, %cst_99 {dimension_numbers = #tpu.dot_dimension_numbers<[1], [0], [0], [1], [0, 0, 1, 1], [], []>} : vector<2x32xf32>, vector<32x128xf32>, vector<2x128xf32> -> vector<2x128xf32>
    %405 = arith.addf %403, %404 : vector<2x128xf32>
    %406 = arith.negf %405 : vector<2x128xf32>
    %407 = math.exp %406 : vector<2x128xf32>
    %cst_100 = arith.constant 1.000000e+00 : f32
    %408 = vector.broadcast %cst_100 : f32 to vector<2x128xf32>
    %409 = arith.addf %408, %407 : vector<2x128xf32>
    %410 = arith.divf %408, %409 : vector<2x128xf32>
    %411 = math.tanh %405 : vector<2x128xf32>
    %412 = vector.extract_strided_slice %410 {offsets = [0, 0], sizes = [2, 32], strides = [1, 1]} : vector<2x128xf32> to vector<2x32xf32>
    %413 = vector.extract_strided_slice %410 {offsets = [0, 32], sizes = [2, 32], strides = [1, 1]} : vector<2x128xf32> to vector<2x32xf32>
    %414 = vector.extract_strided_slice %411 {offsets = [0, 64], sizes = [2, 32], strides = [1, 1]} : vector<2x128xf32> to vector<2x32xf32>
    %415 = vector.extract_strided_slice %410 {offsets = [0, 96], sizes = [2, 32], strides = [1, 1]} : vector<2x128xf32> to vector<2x32xf32>
    %416 = arith.mulf %413, %399 : vector<2x32xf32>
    %417 = arith.mulf %412, %414 : vector<2x32xf32>
    %418 = arith.addf %416, %417 : vector<2x32xf32>
    %419 = math.tanh %418 : vector<2x32xf32>
    %420 = arith.mulf %415, %419 : vector<2x32xf32>
    %c2_101 = arith.constant 2 : index
    %c0_102 = arith.constant 0 : index
    %421 = vector.load %arg17[%c2_101, %c0_102] : memref<16x32xf32, #tpu.memory_space<vmem>>, vector<2x32xf32>
    tpu.vector_store %arg17[%c2_101, %c0_102], %420 {strides = array<i32>} : memref<16x32xf32, #tpu.memory_space<vmem>>, vector<2x32xf32>,
    %c0_103 = arith.constant 0 : index
    %c0_104 = arith.constant 0 : index
    %422 = vector.load %arg17[%c0_103, %c0_104] : memref<16x32xf32, #tpu.memory_space<vmem>>, vector<4x32xf32>
    %c0_105 = arith.constant 0 : index
    %c0_106 = arith.constant 0 : index
    %423 = vector.load %arg13[%c0_105, %c0_106] : memref<32x8xf32, #tpu.memory_space<vmem>>, vector<32x8xf32>
    %cst_107 = arith.constant dense<0.000000e+00> : vector<4x8xf32>
    %424 = tpu.matmul %422, %423, %cst_107 {dimension_numbers = #tpu.dot_dimension_numbers<[1], [0], [0], [1], [0, 0, 1, 1], [], []>} : vector<4x32xf32>, vector<32x8xf32>, vector<4x8xf32> -> vector<4x8xf32>
    %c0_108 = arith.constant 0 : index
    %c0_109 = arith.constant 0 : index
    %425 = vector.load %arg14[%c0_108, %c0_109] : memref<1x8xf32, #tpu.memory_space<vmem>>, vector<1x8xf32>
    %426 = vector.broadcast %425 : vector<1x8xf32> to vector<4x8xf32>
    %427 = arith.addf %424, %426 : vector<4x8xf32>
    %428 = vector.shape_cast %427 : vector<4x8xf32> to vector<2x2x8xf32>
    %429 = vector.extract_strided_slice %428 {offsets = [0, 0, 0], sizes = [2, 1, 8], strides = [1, 1, 1]} : vector<2x2x8xf32> to vector<2x1x8xf32>
    %430 = vector.shape_cast %429 : vector<2x1x8xf32> to vector<2x8xf32>
    %c0_110 = arith.constant 0 : index
    %c0_111 = arith.constant 0 : index
    %c0_112 = arith.constant 0 : index
    %431 = vector.load %arg15[%c0_110, %c0_111, %c0_112] : memref<2x2x8xf32, #tpu.memory_space<vmem>>, vector<1x2x8xf32>
    %432 = vector.shape_cast %431 : vector<1x2x8xf32> to vector<2x8xf32>
    %433 = vector.shape_cast %430 : vector<2x8xf32> to vector<1x2x8xf32>
    tpu.vector_store %arg15[%c0_110, %c0_111, %c0_112], %433 {strides = array<i32>} : memref<2x2x8xf32, #tpu.memory_space<vmem>>, vector<1x2x8xf32>,
    %434 = vector.extract_strided_slice %428 {offsets = [0, 1, 0], sizes = [2, 1, 8], strides = [1, 1, 1]} : vector<2x2x8xf32> to vector<2x1x8xf32>
    %435 = vector.shape_cast %434 : vector<2x1x8xf32> to vector<2x8xf32>
    %c1 = arith.constant 1 : index
    %c0_113 = arith.constant 0 : index
    %c0_114 = arith.constant 0 : index
    %436 = vector.load %arg15[%c1, %c0_113, %c0_114] : memref<2x2x8xf32, #tpu.memory_space<vmem>>, vector<1x2x8xf32>
    %437 = vector.shape_cast %436 : vector<1x2x8xf32> to vector<2x8xf32>
    %438 = vector.shape_cast %435 : vector<2x8xf32> to vector<1x2x8xf32>
    tpu.vector_store %arg15[%c1, %c0_113, %c0_114], %438 {strides = array<i32>} : memref<2x2x8xf32, #tpu.memory_space<vmem>>, vector<1x2x8xf32>,
    return
  }
}

</mosaic_0001>

<bundles_post_ra>
// kernel: lstm_encoder_decoder_forward.1
= control target key start
LH: loop header
LB: loop body
LE: loop exit
PB: predicated region body
PF: predicated region fallthrough
CT: control target
= control target key end

     0   :  { %s4866_s0 = inlined_call_operand.vmem [shape: f32[16,4], index: 0, kind: input, shape index: {}]   ;;  %s4867_s1 = inlined_call_operand.hbm [shape: f32[4,128], index: 1, kind: input, shape index: {}]   ;;  %s4868_s2 = inlined_call_operand.vmem [shape: f32[32,128], index: 2, kind: input, shape index: {}]   ;;  %s4869_s3 = inlined_call_operand.vmem [shape: f32[1,128], index: 3, kind: input, shape index: {}]   ;;  %s4870_s4 = inlined_call_operand.vmem [shape: f32[32,128], index: 4, kind: input, shape index: {}]   ;;  %s4871_s5 = inlined_call_operand.vmem [shape: f32[32,128], index: 5, kind: input, shape index: {}]   ;;  %s4872_s6 = inlined_call_operand.vmem [shape: f32[1,128], index: 6, kind: input, shape index: {}]   ;;  %s4873_s7 = inlined_call_operand.hbm [shape: f32[32,128], index: 7, kind: input, shape index: {}]   ;;  %s4874_s8 = inlined_call_operand.hbm [shape: f32[32,128], index: 8, kind: input, shape index: {}]   ;;  %s4875_s9 = inlined_call_operand.hbm [shape: f32[1,128], index: 9, kind: input, shape index: {}]   ;;  %s4876_s10 = inlined_call_operand.hbm [shape: f32[32,128], index: 10, kind: input, shape index: {}]   ;;  %s4877_s11 = inlined_call_operand.hbm [shape: f32[32,128], index: 11, kind: input, shape index: {}]   ;;  %s4878_s12 = inlined_call_operand.hbm [shape: f32[1,128], index: 12, kind: input, shape index: {}]   ;;  %s4879_s13 = inlined_call_operand.vmem [shape: f32[32,8], index: 13, kind: input, shape index: {}]   ;;  %s4880_s14 = inlined_call_operand.vmem [shape: f32[1,8], index: 14, kind: input, shape index: {}]   ;;  %s4881_s15 = inlined_call_operand.hbm [shape: f32[2,2,8], index: 15, kind: output, shape index: {}]  }
   0x1   :  { %4883 = sst [smem:[#allocation23_spill]] %s4881_s15 }
   0x2   :  { %20 = vsyncpa [#allocation6], 0 }
   0x3   :  { %21 = vsyncpa [#allocation9], 0 }
   0x4   :  { %22 = vsyncpa [#allocation12], 0 }
   0x5   :  { %23 = vsyncpa [#allocation15], 0 }
   0x6   :  { %24 = vsyncpa [#allocation7], 0  ;;  %s4231_s18 = smov [#allocation8]   ;;  %s4045_s22 = scalar_lea.hbm %s4873_s7, 512 }
   0x7   :  { %s52_s19 = sshll.u32 %s4231_s18, 4  ;;  %p4046_p0 = scmp.ne.s32.totalorder %s4873_s7, %s4045_s22  ;;  %s53_s19 = int_to_ptr.vmem [resolvable:$true] %s52_s19 }
   0x8   :  { %p4049_p1 = scmp.lt.u32.totalorder %s4045_s22, %s4873_s7 }
   0xa   :  { %p4051_p2 = pnand %p4049_p1, %p4046_p0 }
   0xc   :  { %4054 = shalt.err (!%p4051_p2)
}
   0xd   :  { %s4055_s27 = scalar_lea.vmem %s53_s19, 512  ;;  %p4060_p4 = scmp.lt.s32.totalorder %s53_s19, %s53_s19 }
   0xe   :  { %p4056_p3 = scmp.ne.s32.totalorder %s53_s19, %s4055_s27  ;;  %p4061_p5 = scmp.lt.s32.totalorder %s4055_s27, %s4055_s27 }
  0x10   :  { %p4062_p6 = por %p4061_p5, %p4060_p4 }
  0x12   :  { %p4063_p7 = pnand %p4062_p6, %p4056_p3 }
  0x14   :  { %4066 = shalt.err (!%p4063_p7)
}
  0x15   :  { %s4232_s28 = smov 128   ;;  %s4233_s29 = smov 8  }
  0x16   :  { %58 = dma.hbm_to_vmem [thread:$0]  %s4873_s7, 512, %s53_s19, [#allocation9], %s4232_s28, %s4232_s28, %s4233_s29  }
  0x17   :  { %s4234_s17 = smov [#allocation11]   ;;  %s4235_s20 = smov [#allocation14]  }
  0x18   :  { %s77_s18 = sshll.u32 %s4234_s17, 4  ;;  %s98_s21 = sshll.u32 %s4235_s20, 4  ;;  %s78_s18 = int_to_ptr.vmem [resolvable:$true] %s77_s18  ;;  %s99_s21 = int_to_ptr.vmem [resolvable:$true] %s98_s21 }
  0x19   :  { %s4067_s24 = scalar_lea.hbm %s4875_s9, 16 }
  0x1a   :  { %p4068_p8 = scmp.ne.s32.totalorder %s4875_s9, %s4067_s24  ;;  %p4071_p9 = scmp.lt.u32.totalorder %s4067_s24, %s4875_s9 }
  0x1c   :  { %p4073_p10 = pnand %p4071_p9, %p4068_p8 }
  0x1e   :  { %4076 = shalt.err (!%p4073_p10)
}
  0x1f   :  { %s4077_s7 = scalar_lea.vmem %s78_s18, 16  ;;  %s4081_s19 = scalar_lea.vmem %s78_s18, 32 }
  0x20   :  { %p4078_p11 = scmp.ne.s32.totalorder %s78_s18, %s4077_s7  ;;  %p4082_p12 = scmp.lt.s32.totalorder %s78_s18, %s78_s18 }
  0x21   :  { %p4083_p13 = scmp.lt.s32.totalorder %s4081_s19, %s4077_s7 }
  0x23   :  { %p4084_p0 = por %p4083_p13, %p4082_p12 }
  0x25   :  { %p4085_p1 = pnand %p4084_p0, %p4078_p11 }
  0x27   :  { %4088 = shalt.err (!%p4085_p1)
}
  0x28   :  { %80 = dma.hbm_to_vmem [thread:$0]  %s4875_s9, 16, %s78_s18, [#allocation12]  }
  0x29   :  { %s4089_s15 = scalar_lea.hbm %s4877_s11, 512 }
  0x2a   :  { %p4090_p2 = scmp.ne.s32.totalorder %s4877_s11, %s4089_s15  ;;  %p4093_p3 = scmp.lt.u32.totalorder %s4089_s15, %s4877_s11 }
  0x2c   :  { %p4095_p4 = pnand %p4093_p3, %p4090_p2 }
  0x2e   :  { %4098 = shalt.err (!%p4095_p4)
}
  0x2f   :  { %s4099_s26 = scalar_lea.vmem %s99_s21, 512  ;;  %p4104_p6 = scmp.lt.s32.totalorder %s99_s21, %s99_s21 }
  0x30   :  { %p4100_p5 = scmp.ne.s32.totalorder %s99_s21, %s4099_s26  ;;  %p4105_p7 = scmp.lt.s32.totalorder %s4099_s26, %s4099_s26 }
  0x32   :  { %p4106_p8 = por %p4105_p7, %p4104_p6 }
  0x34   :  { %p4107_p9 = pnand %p4106_p8, %p4100_p5 }
  0x36   :  { %4110 = shalt.err (!%p4107_p9)
}
  0x37   :  { %104 = dma.hbm_to_vmem [thread:$0]  %s4877_s11, 512, %s99_s21, [#allocation15], %s4232_s28, %s4232_s28, %s4233_s29  }
  0x38   :  { %s4236_s27 = smov [#allocation5]   ;;  %s4237_s19 = smov [#allocation10]  }
  0x39   :  { %s33_s7 = sshll.u32 %s4236_s27, 4  ;;  %s64_s30 = sshll.u32 %s4237_s19, 4  ;;  %s34_s7 = int_to_ptr.vmem [resolvable:$true] %s33_s7  ;;  %s65_s30 = int_to_ptr.vmem [resolvable:$true] %s64_s30 }
  0x3a   :  { %s4111_s20 = scalar_lea.hbm %s4867_s1, 64 }
  0x3b   :  { %p4112_p10 = scmp.ne.s32.totalorder %s4867_s1, %s4111_s20  ;;  %p4115_p11 = scmp.lt.u32.totalorder %s4111_s20, %s4867_s1 }
  0x3d   :  { %p4117_p12 = pnand %p4115_p11, %p4112_p10 }
  0x3f   :  { %4120 = shalt.err (!%p4117_p12)
}
  0x40   :  { %s4121_s11 = scalar_lea.vmem %s34_s7, 64  ;;  %p4126_p0 = scmp.lt.s32.totalorder %s34_s7, %s34_s7 }
  0x41   :  { %p4122_p13 = scmp.ne.s32.totalorder %s34_s7, %s4121_s11  ;;  %p4127_p1 = scmp.lt.s32.totalorder %s4121_s11, %s4121_s11 }
  0x43   :  { %p4128_p2 = por %p4127_p1, %p4126_p0 }
  0x45   :  { %p4129_p3 = pnand %p4128_p2, %p4122_p13 }
  0x47   :  { %4132 = shalt.err (!%p4129_p3)
}
  0x48   :  { %36 = dma.hbm_to_vmem [thread:$0]  %s4867_s1, 64, %s34_s7, [#allocation6]  }
  0x49   :  { %s4133_s18 = scalar_lea.hbm %s4874_s8, 512 }
  0x4a   :  { %p4134_p4 = scmp.ne.s32.totalorder %s4874_s8, %s4133_s18  ;;  %p4137_p5 = scmp.lt.u32.totalorder %s4133_s18, %s4874_s8 }
  0x4c   :  { %p4139_p6 = pnand %p4137_p5, %p4134_p4 }
  0x4e   :  { %4142 = shalt.err (!%p4139_p6)
}
  0x4f   :  { %s4143_s20 = scalar_lea.vmem %s65_s30, 512  ;;  %p4148_p8 = scmp.lt.s32.totalorder %s65_s30, %s65_s30 }
  0x50   :  { %p4144_p7 = scmp.ne.s32.totalorder %s65_s30, %s4143_s20  ;;  %p4149_p9 = scmp.lt.s32.totalorder %s4143_s20, %s4143_s20 }
  0x52   :  { %p4150_p10 = por %p4149_p9, %p4148_p8 }
  0x54   :  { %p4151_p11 = pnand %p4150_p10, %p4144_p7 }
  0x56   :  { %4154 = shalt.err (!%p4151_p11)
}
  0x57   :  { %70 = dma.hbm_to_vmem [thread:$0]  %s4874_s8, 512, %s65_s30, [#allocation9], %s4232_s28, %s4232_s28, %s4233_s29  }
  0x58   :  { %s4238_s15 = smov [#allocation13]   ;;  %s4239_s23 = smov [#allocation16]  }
  0x59   :  { %s86_s22 = sshll.u32 %s4238_s15, 4  ;;  %s111_s24 = sshll.u32 %s4239_s23, 4  ;;  %s87_s22 = int_to_ptr.vmem [resolvable:$true] %s86_s22  ;;  %s112_s24 = int_to_ptr.vmem [resolvable:$true] %s111_s24 }
  0x5a   :  { %s4155_s25 = scalar_lea.hbm %s4876_s10, 512 }
  0x5b   :  { %p4156_p12 = scmp.ne.s32.totalorder %s4876_s10, %s4155_s25  ;;  %p4159_p13 = scmp.lt.u32.totalorder %s4155_s25, %s4876_s10 }
  0x5d   :  { %p4161_p0 = pnand %p4159_p13, %p4156_p12 }
  0x5f   :  { %4164 = shalt.err (!%p4161_p0)
}
  0x60   :  { %s4165_s8 = scalar_lea.vmem %s87_s22, 512  ;;  %p4170_p2 = scmp.lt.s32.totalorder %s87_s22, %s87_s22 }
  0x61   :  { %p4166_p1 = scmp.ne.s32.totalorder %s87_s22, %s4165_s8  ;;  %p4171_p3 = scmp.lt.s32.totalorder %s4165_s8, %s4165_s8 }
  0x63   :  { %p4172_p4 = por %p4171_p3, %p4170_p2 }
  0x65   :  { %p4173_p5 = pnand %p4172_p4, %p4166_p1 }
  0x67   :  { %4176 = shalt.err (!%p4173_p5)
}
  0x68   :  { %92 = dma.hbm_to_vmem [thread:$0]  %s4876_s10, 512, %s87_s22, [#allocation12], %s4232_s28, %s4232_s28, %s4233_s29  }
  0x69   :  { %s4177_s20 = scalar_lea.hbm %s4878_s12, 16 }
  0x6a   :  { %p4178_p6 = scmp.ne.s32.totalorder %s4878_s12, %s4177_s20  ;;  %p4181_p7 = scmp.lt.u32.totalorder %s4177_s20, %s4878_s12 }
  0x6c   :  { %p4183_p8 = pnand %p4181_p7, %p4178_p6 }
  0x6e   :  { %4186 = shalt.err (!%p4183_p8)
}
  0x6f   :  { %s4187_s11 = scalar_lea.vmem %s112_s24, 16  ;;  %s4191_s21 = scalar_lea.vmem %s112_s24, 32 }
  0x70   :  { %p4188_p9 = scmp.ne.s32.totalorder %s112_s24, %s4187_s11  ;;  %p4192_p10 = scmp.lt.s32.totalorder %s112_s24, %s112_s24 }
  0x71   :  { %p4193_p11 = scmp.lt.s32.totalorder %s4191_s21, %s4187_s11 }
  0x73   :  { %p4194_p12 = por %p4193_p11, %p4192_p10 }
  0x75   :  { %p4195_p13 = pnand %p4194_p12, %p4188_p9 }
  0x77   :  { %4198 = shalt.err (!%p4195_p13)
}
  0x78   :  { %114 = dma.hbm_to_vmem [thread:$0]  %s4878_s12, 16, %s112_s24, [#allocation15]  }
  0x79   :  { %4221 = dma.done.wait [#allocation6], 64  }
  0x7a   :  { %4222 = vsyncadd [#allocation6], 4294967232 }
  0x7b   :  { %4223 = dma.done.wait [#allocation9], 1024  }
  0x7c   :  { %4224 = vsyncadd [#allocation9], 4294966272 }
  0x7d   :  { %4225 = dma.done.wait [#allocation12], 528  }
  0x7e   :  { %4226 = vsyncadd [#allocation12], 4294966768 }
  0x7f   :  { %4227 = dma.done.wait [#allocation15], 528  }
  0x80   :  { %4228 = vsyncadd [#allocation15], 4294966768  ;;  %v4240_v0 = vmov 0.0|0.0   ;;  %vm4241_vm0 = vmmov 0   ;;  %v4242_v1 = vmov 0.0   ;;  %vm161_vm1 = vcmask 1043456  }
  0x81   :  { %3642 = vmatprep.subr.bf16.mxu1 %v4240_v0  ;;  %3386 = vmatprep.mubr.msk.f32.mxu1 %vm4241_vm0, %v4242_v1  ;;  %vm154_vm2 = vcmask 31744   ;;  %v140_v2 = vld [vmem:[%s4868_s2] sm:$0xff]  ;;  %v141_v3 = vld [vmem:[%s4868_s2 + $0x8] sm:$0xff]  ;;  %v146_v4 = vld [vmem:[#allocation5] sm:$0xf]  ;;  %s4243_s16 = smov 64  }
  0x82   :  { %v4433_v5 = vpack.c.bf16 %v141_v3, %v140_v2  ;;  %3373 = vmatprep.subr.msk.mxu0 %vm161_vm1, %v146_v4  ;;  %v144_v6 = vld [vmem:[%s4866_s0] sm:$0xff]  ;;  %v145_v7 = vld [vmem:[%s4866_s0 + $0x8] sm:$0xff]  ;;  %v142_v8 = vld [vmem:[%s4868_s2 + $0x10] sm:$0xff]  ;;  %vm371_vm3 = vcmask 1041409   ;;  %vm376_vm4 = vcmask 254976   ;;  %vm240_vm5 = vcmask 261120  }
  0x83   :  { %3374 = vmatpush3.msk.msra.mxu0 %vm161_vm1, %v146_v4  ;;  %3375 = vmatprep.mubr.msk.f32.mxu0 %vm154_vm2, %v144_v6  ;;  %v143_v9 = vld [vmem:[%s4868_s2 + $0x18] sm:$0xff]  ;;  %v3190_v13 = vld [vmem:[%s4869_s3] ss:$0 sm:$0xff]  ;;  %s4244_s3 = smov 32   ;;  %vm513_vm6 = vcmask 1042434   ;;  %vm660_vm7 = vcmask 1043459  }
  0x84   :  { %3644 = vmatpush3.bf16.msra.mxu1 %v4433_v5  ;;  %3376 = vmatmul.mubr.msk.f32.vlgmr.msra.gmra.mrb[0].mxu0 %vm154_vm2, %v145_v7  ;;  %v4448_v10 = vpack.c.bf16 %v143_v9, %v142_v8  ;;  %vm808_vm8 = vcmask 1044484   ;;  %vm956_vm9 = vcmask 1045509   ;;  %vm1104_vm10 = vcmask 1046534  }
  0x85   :  { %3645 = vmatprep.subr.bf16.mxu1 %v4240_v0  ;;  %3648 = vmatprep.subr.bf16.mxu0 %v4240_v0  ;;  %vm1252_vm11 = vcmask 1047559   ;;  %vm665_vm12 = vcmask 257026   ;;  %vm518_vm13 = vcmask 256001   ;;  %vm961_vm14 = vcmask 259076  }
  0x86   :  { %3650 = vmatpush3.bf16.msra.mxu0 %v4433_v5  ;;  %3397 = vmatprep.mubr.msk.f32.mxu0 %vm4241_vm0, %v4242_v1  ;;  %vm813_vm15 = vcmask 258051   ;;  %vm1257_vm1 = vcmask 261126   ;;  %vm1109_vm2 = vcmask 260101  }
  0x87   :  { %3651 = vmatprep.subr.bf16.mxu0 %v4240_v0 }
  0x88   :  { %3647 = vmatpush3.bf16.msra.mxu1 %v4448_v10 }
  0x89   :  { %3654 = vmatprep.subr.bf16.mxu1 %v4240_v0 }
  0x8a   :  { %3653 = vmatpush3.bf16.msra.mxu0 %v4448_v10 }
  0x8b   :  { %3387 = vmatmul.mubr.f32.vlgmr.msra.gmra.mrb[0].mxu1 %v4242_v1  ;;  %3660 = vmatprep.subr.bf16.mxu0 %v4240_v0 }
  0x8c   :  { %3656 = vmatpush3.bf16.msra.mxu1 %v4433_v5  ;;  %3408 = vmatprep.mubr.msk.f32.mxu1 %vm4241_vm0, %v4242_v1 }
  0x8d   :  { %3657 = vmatprep.subr.bf16.mxu1 %v4240_v0 }
  0x90   :  { %3659 = vmatpush3.bf16.msra.mxu1 %v4448_v10 }
  0x91   :  { %3666 = vmatprep.subr.bf16.mxu1 %v4240_v0 }
 0x157   :  { %v3377_v11 = vpop.f32.mrb[0].mxu0 }
 0x158   :  { %v231_v12 = vpop.f32.mrb[1].mxu0  ;;  %v4470_v14 = vadd.f32 %v3377_v11, %v3190_v13 }
 0x159   :  { %v4472_v18 = vadd.f32 %v3190_v13, %v231_v12 }
 0x15e   :  { %v310_v15 = vpop.f32.mrb[0].mxu1 }
 0x15f   :  { %v315_v16 = vrot.slane %v310_v15, 1  ;;  %v3388_v17 = vpop.f32.mrb[1].mxu1  ;;  %v318_v20 = vadd.f32 %v310_v15, %v4472_v18 }
 0x161   :  { %v319_v19 = vadd.f32 %v315_v16, %v4470_v14  ;;  %v3194_v24 = vmul.f32 -1.442695, %v318_v20 }
 0x163   :  { %3805 = vtanh.f32 %v319_v19  ;;  %v3195_v23 = vmul.f32 -1.442695, %v319_v19 }
 0x164   :  { %3807 = vtanh.f32 %v318_v20 }
 0x165   :  { %3809 = vpow2.f32 %v3195_v23 }
 0x166   :  { %3811 = vpow2.f32 %v3194_v24 }
 0x16d   :  { %v3806_v21 = vpop.eup %3805 }
 0x16e   :  { %340 = vrot.lane.b32.xlu0 %v3806_v21, %s4243_s16  ;;  %v3808_v22 = vpop.eup %3807 }
 0x16f   :  { %v3810_v25 = vpop.eup %3809 }
 0x170   :  { %v327_v26 = vadd.f32 1.0, %v3810_v25  ;;  %v3812_v27 = vpop.eup %3811 }
 0x171   :  { %v326_v28 = vadd.f32 1.0, %v3812_v27 }
 0x172   :  { %338 = vrot.lane.b32.xlu0 %v3808_v22, %s4243_s16  ;;  %3813 = vrcp.f32 %v327_v26 }
 0x173   :  { %3815 = vrcp.f32 %v326_v28 }
 0x17c   :  { %v3814_v29 = vpop.eup %3813 }
 0x17d   :  { %v3816_v32 = vpop.eup %3815  ;;  %v335_v35 = vmul.f32 0.0, %v3814_v29 }
 0x17e   :  { %v334_v38 = vmul.f32 0.0, %v3816_v32 }
 0x1e0   :  { %v341_v30 = vpop.permute.xlu0 %340 }
 0x1e1   :  { %v345_v31 = vmul.f32 %v3814_v29, %v341_v30 }
 0x1e3   :  { %350 = vrot.lane.b32.xlu1 %v345_v31, %s4244_s3 }
 0x1e4   :  { %v339_v33 = vpop.permute.xlu0 %338 }
 0x1e5   :  { %v344_v34 = vmul.f32 %v3816_v32, %v339_v33 }
 0x1e7   :  { %348 = vrot.lane.b32.xlu1 %v344_v34, %s4244_s3 }
 0x255   :  { %v351_v36 = vpop.permute.xlu1 %350 }
 0x256   :  { %v355_v37 = vadd.f32 %v351_v36, %v335_v35 }
 0x258   :  { %3817 = vtanh.f32 %v355_v37  ;;  %v473_v8 = vrot.slane %v355_v37, 7 }
 0x259   :  { %v349_v39 = vpop.permute.xlu1 %348 }
 0x25a   :  { %v354_v40 = vadd.f32 %v349_v39, %v334_v38 }
 0x25c   :  { %3819 = vtanh.f32 %v354_v40  ;;  %v472_v11 = vrot.slane %v354_v40, 7 }
 0x262   :  { %v3818_v41 = vpop.eup %3817 }
 0x263   :  { %362 = vrot.lane.b32.xlu0 %v3818_v41, %s4243_s16 }
 0x266   :  { %v3820_v42 = vpop.eup %3819 }
 0x267   :  { %360 = vrot.lane.b32.xlu1 %v3820_v42, %s4243_s16 }
 0x2d5   :  { %v363_v43 = vpop.permute.xlu0 %362 }
 0x2d6   :  { %v367_v44 = vmul.f32 %v3814_v29, %v363_v43 }
 0x2d8   :  { %v370_v46 = vrot.slane %v367_v44, 7 }
 0x2d9   :  { %v361_v45 = vpop.permute.xlu1 %360 }
 0x2da   :  { %v366_v47 = vmul.f32 %v3816_v32, %v361_v45 }
 0x2dc   :  { %v372_v48 = vsel %vm371_vm3, %v370_v46, %v366_v47 }
 0x2dd   :  { %373 = vrot.lane.b32.xlu0 %v372_v48, %s4244_s3 }
 0x34f   :  { %v374_v49 = vpop.permute.xlu0 %373 }
 0x350   :  { %377 = vst.msk [vmem:[#allocation2] sm:$0x3] %vm376_vm4, %v374_v49  ;;  %3398 = vmatmul.mubr.msk.f32.vlgmr.msra.gmra.mrb[2].mxu0 %vm240_vm5, %v374_v49 }
 0x351   :  { %3662 = vmatpush3.bf16.msra.mxu0 %v4433_v5  ;;  %3419 = vmatprep.mubr.msk.f32.mxu0 %vm4241_vm0, %v4242_v1 }
 0x352   :  { %3663 = vmatprep.subr.bf16.mxu0 %v4240_v0 }
 0x355   :  { %3665 = vmatpush3.bf16.msra.mxu0 %v4448_v10 }
 0x356   :  { %3672 = vmatprep.subr.bf16.mxu0 %v4240_v0 }
 0x423   :  { %v446_v50 = vpop.f32.mrb[2].mxu0 }
 0x424   :  { %v451_v51 = vrot.slane %v446_v50, 7  ;;  %v455_v52 = vadd.f32 %v446_v50, %v4470_v14  ;;  %v3399_v53 = vpop.f32.mrb[3].mxu0 }
 0x426   :  { %v454_v54 = vadd.f32 %v451_v51, %v4472_v18  ;;  %3821 = vtanh.f32 %v455_v52  ;;  %v3198_v57 = vmul.f32 -1.442695, %v455_v52 }
 0x428   :  { %3823 = vtanh.f32 %v454_v54  ;;  %v3197_v58 = vmul.f32 -1.442695, %v454_v54 }
 0x429   :  { %3825 = vpow2.f32 %v3198_v57 }
 0x42a   :  { %3827 = vpow2.f32 %v3197_v58 }
 0x430   :  { %v3822_v55 = vpop.eup %3821 }
 0x431   :  { %482 = vrot.lane.b32.xlu0 %v3822_v55, %s4243_s16 }
 0x432   :  { %v3824_v56 = vpop.eup %3823 }
 0x433   :  { %480 = vrot.lane.b32.xlu1 %v3824_v56, %s4243_s16  ;;  %v3826_v59 = vpop.eup %3825 }
 0x434   :  { %v3828_v60 = vpop.eup %3827  ;;  %v463_v61 = vadd.f32 1.0, %v3826_v59 }
 0x435   :  { %v462_v62 = vadd.f32 1.0, %v3828_v60 }
 0x436   :  { %3829 = vrcp.f32 %v463_v61 }
 0x437   :  { %3831 = vrcp.f32 %v462_v62 }
 0x440   :  { %v3830_v63 = vpop.eup %3829 }
 0x441   :  { %v3832_v4 = vpop.eup %3831  ;;  %v477_v9 = vmul.f32 %v3830_v63, %v473_v8 }
 0x442   :  { %v476_v15 = vmul.f32 %v3832_v4, %v472_v11 }
 0x4a3   :  { %v483_v2 = vpop.permute.xlu0 %482 }
 0x4a4   :  { %v487_v3 = vmul.f32 %v3830_v63, %v483_v2 }
 0x4a5   :  { %v481_v6 = vpop.permute.xlu1 %480 }
 0x4a6   :  { %492 = vrot.lane.b32.xlu0 %v487_v3, %s4244_s3  ;;  %v486_v7 = vmul.f32 %v3832_v4, %v481_v6 }
 0x4a8   :  { %490 = vrot.lane.b32.xlu1 %v486_v7, %s4244_s3 }
 0x518   :  { %v493_v12 = vpop.permute.xlu0 %492 }
 0x519   :  { %v497_v13 = vadd.f32 %v493_v12, %v477_v9 }
 0x51a   :  { %v491_v16 = vpop.permute.xlu1 %490 }
 0x51b   :  { %3833 = vtanh.f32 %v497_v13  ;;  %v496_v17 = vadd.f32 %v491_v16, %v476_v15  ;;  %v620_v51 = vrot.slane %v497_v13, 7 }
 0x51d   :  { %3835 = vtanh.f32 %v496_v17  ;;  %v619_v50 = vrot.slane %v496_v17, 7 }
 0x525   :  { %v3834_v19 = vpop.eup %3833 }
 0x526   :  { %504 = vrot.lane.b32.xlu0 %v3834_v19, %s4243_s16 }
 0x527   :  { %v3836_v20 = vpop.eup %3835 }
 0x528   :  { %502 = vrot.lane.b32.xlu1 %v3836_v20, %s4243_s16 }
 0x598   :  { %v505_v21 = vpop.permute.xlu0 %504 }
 0x599   :  { %v509_v22 = vmul.f32 %v3830_v63, %v505_v21 }
 0x59a   :  { %v503_v24 = vpop.permute.xlu1 %502 }
 0x59b   :  { %v512_v23 = vrot.slane %v509_v22, 7  ;;  %v508_v25 = vmul.f32 %v3832_v4, %v503_v24 }
 0x59d   :  { %v520_v26 = vrot.slane %v508_v25, 1  ;;  %v4501_v27 = vsel %vm513_vm6, %v512_v23, %v508_v25 }
 0x59f   :  { %v521_v28 = vsel %vm371_vm3, %v509_v22, %v520_v26 }
 0x5a0   :  { %522 = vrot.lane.b32.xlu1 %v521_v28, %s4244_s3 }
 0x612   :  { %v523_v29 = vpop.permute.xlu1 %522 }
 0x613   :  { %3409 = vmatmul.mubr.msk.f32.vlgmr.msra.gmra.mrb[2].mxu1 %vm240_vm5, %v523_v29 }
 0x614   :  { %3668 = vmatpush3.bf16.msra.mxu1 %v4433_v5  ;;  %3430 = vmatprep.mubr.msk.f32.mxu1 %vm4241_vm0, %v4242_v1 }
 0x615   :  { %3669 = vmatprep.subr.bf16.mxu1 %v4240_v0 }
 0x618   :  { %3671 = vmatpush3.bf16.msra.mxu1 %v4448_v10 }
 0x619   :  { %3678 = vmatprep.subr.bf16.mxu1 %v4240_v0 }
 0x6e6   :  { %v592_v30 = vpop.f32.mrb[2].mxu1 }
 0x6e7   :  { %v597_v31 = vrot.slane %v592_v30, 6  ;;  %v598_v32 = vrot.slane %v592_v30, 7  ;;  %v3410_v33 = vpop.f32.mrb[3].mxu1 }
 0x6e9   :  { %v601_v34 = vadd.f32 %v597_v31, %v4472_v18  ;;  %v602_v35 = vadd.f32 %v598_v32, %v4470_v14 }
 0x6eb   :  { %3837 = vtanh.f32 %v601_v34  ;;  %v3200_v38 = vmul.f32 -1.442695, %v601_v34  ;;  %v3201_v39 = vmul.f32 -1.442695, %v602_v35 }
 0x6ec   :  { %3839 = vtanh.f32 %v602_v35 }
 0x6ed   :  { %3841 = vpow2.f32 %v3200_v38 }
 0x6ee   :  { %3843 = vpow2.f32 %v3201_v39 }
 0x6f5   :  { %v3838_v36 = vpop.eup %3837 }
 0x6f6   :  { %v3840_v37 = vpop.eup %3839  ;;  %627 = vrot.lane.b32.xlu0 %v3838_v36, %s4243_s16 }
 0x6f7   :  { %629 = vrot.lane.b32.xlu1 %v3840_v37, %s4243_s16  ;;  %v3842_v40 = vpop.eup %3841 }
 0x6f8   :  { %v3844_v41 = vpop.eup %3843  ;;  %v609_v42 = vadd.f32 1.0, %v3842_v40 }
 0x6f9   :  { %v610_v43 = vadd.f32 1.0, %v3844_v41 }
 0x6fa   :  { %3845 = vrcp.f32 %v609_v42 }
 0x6fb   :  { %3847 = vrcp.f32 %v610_v43 }
 0x704   :  { %v3846_v44 = vpop.eup %3845 }
 0x705   :  { %v3848_v46 = vpop.eup %3847  ;;  %v623_v52 = vmul.f32 %v3846_v44, %v619_v50 }
 0x706   :  { %v624_v53 = vmul.f32 %v3848_v46, %v620_v51 }
 0x768   :  { %v628_v45 = vpop.permute.xlu0 %627 }
 0x769   :  { %v630_v47 = vpop.permute.xlu1 %629  ;;  %v633_v48 = vmul.f32 %v3846_v44, %v628_v45 }
 0x76a   :  { %v634_v49 = vmul.f32 %v3848_v46, %v630_v47 }
 0x76b   :  { %637 = vrot.lane.b32.xlu0 %v633_v48, %s4244_s3 }
 0x76c   :  { %639 = vrot.lane.b32.xlu1 %v634_v49, %s4244_s3 }
 0x7dd   :  { %v638_v54 = vpop.permute.xlu0 %637 }
 0x7de   :  { %v640_v55 = vpop.permute.xlu1 %639  ;;  %v643_v56 = vadd.f32 %v638_v54, %v623_v52 }
 0x7df   :  { %v644_v57 = vadd.f32 %v640_v55, %v624_v53 }
 0x7e0   :  { %3849 = vtanh.f32 %v643_v56  ;;  %v767_v33 = vrot.slane %v643_v56, 7 }
 0x7e1   :  { %3851 = vtanh.f32 %v644_v57  ;;  %v768_v34 = vrot.slane %v644_v57, 7 }
 0x7ea   :  { %v3850_v58 = vpop.eup %3849 }
 0x7eb   :  { %v3852_v59 = vpop.eup %3851  ;;  %649 = vrot.lane.b32.xlu0 %v3850_v58, %s4243_s16 }
 0x7ec   :  { %651 = vrot.lane.b32.xlu1 %v3852_v59, %s4243_s16 }
 0x85d   :  { %v650_v60 = vpop.permute.xlu0 %649 }
 0x85e   :  { %v652_v61 = vpop.permute.xlu1 %651  ;;  %v655_v62 = vmul.f32 %v3846_v44, %v650_v60 }
 0x85f   :  { %v656_v63 = vmul.f32 %v3848_v46, %v652_v61 }
 0x860   :  { %v667_v2 = vrot.slane %v655_v62, 2 }
 0x861   :  { %v659_v3 = vrot.slane %v656_v63, 7  ;;  %v668_v4 = vrot.slane %v656_v63, 1 }
 0x863   :  { %v669_v6 = vsel %vm371_vm3, %v668_v4, %v667_v2  ;;  %v4521_v7 = vsel %vm660_vm7, %v659_v3, %v655_v62  ;;  %vm1406_vm7 = vcmask 261127  }
 0x864   :  { %670 = vrot.lane.b32.xlu0 %v669_v6, %s4244_s3 }
 0x8d6   :  { %v671_v8 = vpop.permute.xlu0 %670 }
 0x8d7   :  { %3420 = vmatmul.mubr.msk.f32.vlgmr.msra.gmra.mrb[4].mxu0 %vm240_vm5, %v671_v8 }
 0x8d8   :  { %3674 = vmatpush3.bf16.msra.mxu0 %v4433_v5  ;;  %3441 = vmatprep.mubr.msk.f32.mxu0 %vm4241_vm0, %v4242_v1 }
 0x8d9   :  { %3675 = vmatprep.subr.bf16.mxu0 %v4240_v0 }
 0x8dc   :  { %3677 = vmatpush3.bf16.msra.mxu0 %v4448_v10 }
 0x8dd   :  { %3684 = vmatprep.subr.bf16.mxu0 %v4240_v0 }
 0x9aa   :  { %v740_v9 = vpop.f32.mrb[4].mxu0 }
 0x9ab   :  { %v745_v11 = vrot.slane %v740_v9, 5  ;;  %v746_v12 = vrot.slane %v740_v9, 6  ;;  %v3421_v13 = vpop.f32.mrb[5].mxu0 }
 0x9ad   :  { %v749_v15 = vadd.f32 %v745_v11, %v4472_v18  ;;  %v750_v16 = vadd.f32 %v746_v12, %v4470_v14 }
 0x9af   :  { %3853 = vtanh.f32 %v749_v15  ;;  %v3203_v20 = vmul.f32 -1.442695, %v749_v15  ;;  %v3204_v21 = vmul.f32 -1.442695, %v750_v16 }
 0x9b0   :  { %3855 = vtanh.f32 %v750_v16 }
 0x9b1   :  { %3857 = vpow2.f32 %v3203_v20 }
 0x9b2   :  { %3859 = vpow2.f32 %v3204_v21 }
 0x9b9   :  { %v3854_v17 = vpop.eup %3853 }
 0x9ba   :  { %v3856_v19 = vpop.eup %3855  ;;  %775 = vrot.lane.b32.xlu1 %v3854_v17, %s4243_s16 }
 0x9bb   :  { %777 = vrot.lane.b32.xlu0 %v3856_v19, %s4243_s16  ;;  %v3858_v22 = vpop.eup %3857 }
 0x9bc   :  { %v3860_v23 = vpop.eup %3859  ;;  %v757_v24 = vadd.f32 1.0, %v3858_v22 }
 0x9bd   :  { %v758_v25 = vadd.f32 1.0, %v3860_v23 }
 0x9be   :  { %3861 = vrcp.f32 %v757_v24 }
 0x9bf   :  { %3863 = vrcp.f32 %v758_v25 }
 0x9c8   :  { %v3862_v26 = vpop.eup %3861 }
 0x9c9   :  { %v3864_v29 = vpop.eup %3863  ;;  %v771_v35 = vmul.f32 %v3862_v26, %v767_v33 }
 0x9ca   :  { %v772_v36 = vmul.f32 %v3864_v29, %v768_v34 }
 0xa2c   :  { %v776_v28 = vpop.permute.xlu1 %775 }
 0xa2d   :  { %v778_v30 = vpop.permute.xlu0 %777  ;;  %v781_v31 = vmul.f32 %v3862_v26, %v776_v28 }
 0xa2e   :  { %v782_v32 = vmul.f32 %v3864_v29, %v778_v30 }
 0xa2f   :  { %785 = vrot.lane.b32.xlu1 %v781_v31, %s4244_s3 }
 0xa30   :  { %787 = vrot.lane.b32.xlu0 %v782_v32, %s4244_s3 }
 0xaa1   :  { %v786_v37 = vpop.permute.xlu1 %785 }
 0xaa2   :  { %v788_v38 = vpop.permute.xlu0 %787  ;;  %v791_v39 = vadd.f32 %v786_v37, %v771_v35 }
 0xaa3   :  { %v792_v40 = vadd.f32 %v788_v38, %v772_v36 }
 0xaa4   :  { %3865 = vtanh.f32 %v791_v39  ;;  %v915_v15 = vrot.slane %v791_v39, 7 }
 0xaa5   :  { %3867 = vtanh.f32 %v792_v40  ;;  %v916_v16 = vrot.slane %v792_v40, 7 }
 0xaae   :  { %v3866_v41 = vpop.eup %3865 }
 0xaaf   :  { %v3868_v42 = vpop.eup %3867  ;;  %797 = vrot.lane.b32.xlu1 %v3866_v41, %s4243_s16 }
 0xab0   :  { %799 = vrot.lane.b32.xlu0 %v3868_v42, %s4243_s16 }
 0xb21   :  { %v798_v43 = vpop.permute.xlu1 %797 }
 0xb22   :  { %v800_v44 = vpop.permute.xlu0 %799  ;;  %v803_v45 = vmul.f32 %v3862_v26, %v798_v43 }
 0xb23   :  { %v804_v46 = vmul.f32 %v3864_v29, %v800_v44 }
 0xb24   :  { %v815_v47 = vrot.slane %v803_v45, 3 }
 0xb25   :  { %v807_v48 = vrot.slane %v804_v46, 7  ;;  %v816_v49 = vrot.slane %v804_v46, 2 }
 0xb27   :  { %v817_v50 = vsel %vm371_vm3, %v816_v49, %v815_v47  ;;  %v4540_v51 = vsel %vm808_vm8, %v807_v48, %v803_v45  ;;  %vm1408_vm8 = vcmask 253952  }
 0xb28   :  { %818 = vrot.lane.b32.xlu1 %v817_v50, %s4244_s3 }
 0xb9a   :  { %v819_v52 = vpop.permute.xlu1 %818 }
 0xb9b   :  { %3431 = vmatmul.mubr.msk.f32.vlgmr.msra.gmra.mrb[4].mxu1 %vm240_vm5, %v819_v52 }
 0xb9c   :  { %3680 = vmatpush3.bf16.msra.mxu1 %v4433_v5  ;;  %3452 = vmatprep.mubr.msk.f32.mxu1 %vm4241_vm0, %v4242_v1 }
 0xb9d   :  { %3681 = vmatprep.subr.bf16.mxu1 %v4240_v0 }
 0xba0   :  { %3683 = vmatpush3.bf16.msra.mxu1 %v4448_v10 }
 0xc6e   :  { %v888_v53 = vpop.f32.mrb[4].mxu1 }
 0xc6f   :  { %v893_v54 = vrot.slane %v888_v53, 4  ;;  %v894_v55 = vrot.slane %v888_v53, 5  ;;  %v3432_v56 = vpop.f32.mrb[5].mxu1 }
 0xc71   :  { %v897_v57 = vadd.f32 %v893_v54, %v4472_v18  ;;  %v898_v58 = vadd.f32 %v894_v55, %v4470_v14 }
 0xc73   :  { %3869 = vtanh.f32 %v897_v57  ;;  %v3206_v61 = vmul.f32 -1.442695, %v897_v57  ;;  %v3207_v62 = vmul.f32 -1.442695, %v898_v58 }
 0xc74   :  { %3871 = vtanh.f32 %v898_v58 }
 0xc75   :  { %3873 = vpow2.f32 %v3206_v61 }
 0xc76   :  { %3875 = vpow2.f32 %v3207_v62 }
 0xc7d   :  { %v3870_v59 = vpop.eup %3869 }
 0xc7e   :  { %v3872_v60 = vpop.eup %3871  ;;  %923 = vrot.lane.b32.xlu0 %v3870_v59, %s4243_s16 }
 0xc7f   :  { %925 = vrot.lane.b32.xlu1 %v3872_v60, %s4243_s16  ;;  %v3874_v63 = vpop.eup %3873 }
 0xc80   :  { %v3876_v2 = vpop.eup %3875  ;;  %v905_v3 = vadd.f32 1.0, %v3874_v63 }
 0xc81   :  { %v906_v4 = vadd.f32 1.0, %v3876_v2 }
 0xc82   :  { %3877 = vrcp.f32 %v905_v3 }
 0xc83   :  { %3879 = vrcp.f32 %v906_v4 }
 0xc8c   :  { %v3878_v6 = vpop.eup %3877 }
 0xc8d   :  { %v3880_v9 = vpop.eup %3879  ;;  %v919_v17 = vmul.f32 %v3878_v6, %v915_v15 }
 0xc8e   :  { %v920_v19 = vmul.f32 %v3880_v9, %v916_v16 }
 0xcf0   :  { %v924_v8 = vpop.permute.xlu0 %923 }
 0xcf1   :  { %v926_v11 = vpop.permute.xlu1 %925  ;;  %v929_v12 = vmul.f32 %v3878_v6, %v924_v8 }
 0xcf2   :  { %v930_v13 = vmul.f32 %v3880_v9, %v926_v11 }
 0xcf3   :  { %933 = vrot.lane.b32.xlu0 %v929_v12, %s4244_s3 }
 0xcf4   :  { %935 = vrot.lane.b32.xlu1 %v930_v13, %s4244_s3 }
 0xd65   :  { %v934_v20 = vpop.permute.xlu0 %933 }
 0xd66   :  { %v936_v21 = vpop.permute.xlu1 %935  ;;  %v939_v22 = vadd.f32 %v934_v20, %v919_v17 }
 0xd67   :  { %v940_v23 = vadd.f32 %v936_v21, %v920_v19 }
 0xd68   :  { %3881 = vtanh.f32 %v939_v22  ;;  %v1063_v56 = vrot.slane %v939_v22, 7 }
 0xd69   :  { %3883 = vtanh.f32 %v940_v23  ;;  %v1064_v57 = vrot.slane %v940_v23, 7 }
 0xd72   :  { %v3882_v24 = vpop.eup %3881 }
 0xd73   :  { %v3884_v25 = vpop.eup %3883  ;;  %945 = vrot.lane.b32.xlu0 %v3882_v24, %s4243_s16 }
 0xd74   :  { %947 = vrot.lane.b32.xlu1 %v3884_v25, %s4243_s16 }
 0xde5   :  { %v946_v26 = vpop.permute.xlu0 %945 }
 0xde6   :  { %v948_v28 = vpop.permute.xlu1 %947  ;;  %v951_v29 = vmul.f32 %v3878_v6, %v946_v26 }
 0xde7   :  { %v952_v30 = vmul.f32 %v3880_v9, %v948_v28 }
 0xde8   :  { %v963_v31 = vrot.slane %v951_v29, 4 }
 0xde9   :  { %v955_v32 = vrot.slane %v952_v30, 7  ;;  %v964_v33 = vrot.slane %v952_v30, 3 }
 0xdeb   :  { %v965_v34 = vsel %vm371_vm3, %v964_v33, %v963_v31  ;;  %v4558_v35 = vsel %vm956_vm9, %v955_v32, %v951_v29 }
 0xdec   :  { %966 = vrot.lane.b32.xlu0 %v965_v34, %s4244_s3 }
 0xe5e   :  { %v967_v36 = vpop.permute.xlu0 %966 }
 0xe5f   :  { %3442 = vmatmul.mubr.msk.f32.vlgmr.msra.gmra.mrb[6].mxu0 %vm240_vm5, %v967_v36 }
 0xe60   :  { %3686 = vmatpush3.bf16.msra.mxu0 %v4433_v5  ;;  %3463 = vmatprep.mubr.msk.f32.mxu0 %vm4241_vm0, %v4242_v1 }
 0xe61   :  { %3687 = vmatprep.subr.bf16.mxu0 %v4240_v0 }
 0xe64   :  { %3689 = vmatpush3.bf16.msra.mxu0 %v4448_v10 }
 0xe65   :  { %3698 = vmatprep.subr.bf16.mxu0 %v4240_v0 }
 0xf32   :  { %v1036_v37 = vpop.f32.mrb[6].mxu0 }
 0xf33   :  { %v1041_v38 = vrot.slane %v1036_v37, 3  ;;  %v1042_v39 = vrot.slane %v1036_v37, 4  ;;  %v3443_v40 = vpop.f32.mrb[7].mxu0 }
 0xf35   :  { %v1045_v41 = vadd.f32 %v1041_v38, %v4472_v18  ;;  %v1046_v42 = vadd.f32 %v1042_v39, %v4470_v14 }
 0xf37   :  { %3885 = vtanh.f32 %v1045_v41  ;;  %v3209_v44 = vmul.f32 -1.442695, %v1045_v41  ;;  %v3210_v10 = vmul.f32 -1.442695, %v1046_v42 }
 0xf38   :  { %3887 = vtanh.f32 %v1046_v42 }
 0xf39   :  { %3889 = vpow2.f32 %v3209_v44 }
 0xf3a   :  { %3891 = vpow2.f32 %v3210_v10 }
 0xf41   :  { %v3886_v5 = vpop.eup %3885 }
 0xf42   :  { %v3888_v43 = vpop.eup %3887  ;;  %1071 = vrot.lane.b32.xlu1 %v3886_v5, %s4243_s16 }
 0xf43   :  { %1073 = vrot.lane.b32.xlu0 %v3888_v43, %s4243_s16  ;;  %v3890_v45 = vpop.eup %3889 }
 0xf44   :  { %v3892_v46 = vpop.eup %3891  ;;  %v1053_v47 = vadd.f32 1.0, %v3890_v45 }
 0xf45   :  { %v1054_v48 = vadd.f32 1.0, %v3892_v46 }
 0xf46   :  { %3893 = vrcp.f32 %v1053_v47 }
 0xf47   :  { %3895 = vrcp.f32 %v1054_v48 }
 0xf50   :  { %v3894_v49 = vpop.eup %3893 }
 0xf51   :  { %v3896_v52 = vpop.eup %3895  ;;  %v1067_v58 = vmul.f32 %v3894_v49, %v1063_v56 }
 0xf52   :  { %v1068_v59 = vmul.f32 %v3896_v52, %v1064_v57 }
 0xfb4   :  { %v1072_v50 = vpop.permute.xlu1 %1071 }
 0xfb5   :  { %v1074_v53 = vpop.permute.xlu0 %1073  ;;  %v1077_v54 = vmul.f32 %v3894_v49, %v1072_v50 }
 0xfb6   :  { %v1078_v55 = vmul.f32 %v3896_v52, %v1074_v53 }
 0xfb7   :  { %1081 = vrot.lane.b32.xlu1 %v1077_v54, %s4244_s3 }
 0xfb8   :  { %1083 = vrot.lane.b32.xlu0 %v1078_v55, %s4244_s3 }
0x1029   :  { %v1082_v60 = vpop.permute.xlu1 %1081 }
0x102a   :  { %v1084_v61 = vpop.permute.xlu0 %1083  ;;  %v1087_v62 = vadd.f32 %v1082_v60, %v1067_v58 }
0x102b   :  { %v1088_v63 = vadd.f32 %v1084_v61, %v1068_v59 }
0x102c   :  { %3897 = vtanh.f32 %v1087_v62  ;;  %v1211_v41 = vrot.slane %v1087_v62, 7 }
0x102d   :  { %3899 = vtanh.f32 %v1088_v63  ;;  %v1212_v42 = vrot.slane %v1088_v63, 7 }
0x1036   :  { %v3898_v2 = vpop.eup %3897 }
0x1037   :  { %v3900_v3 = vpop.eup %3899  ;;  %1093 = vrot.lane.b32.xlu1 %v3898_v2, %s4243_s16 }
0x1038   :  { %1095 = vrot.lane.b32.xlu0 %v3900_v3, %s4243_s16 }
0x10a9   :  { %v1094_v4 = vpop.permute.xlu1 %1093 }
0x10aa   :  { %v1096_v6 = vpop.permute.xlu0 %1095  ;;  %v1099_v8 = vmul.f32 %v3894_v49, %v1094_v4 }
0x10ab   :  { %v1100_v9 = vmul.f32 %v3896_v52, %v1096_v6 }
0x10ac   :  { %v1111_v11 = vrot.slane %v1099_v8, 5 }
0x10ad   :  { %v1103_v12 = vrot.slane %v1100_v9, 7  ;;  %v1112_v13 = vrot.slane %v1100_v9, 4 }
0x10af   :  { %v1113_v15 = vsel %vm371_vm3, %v1112_v13, %v1111_v11  ;;  %v4577_v16 = vsel %vm1104_vm10, %v1103_v12, %v1099_v8 }
0x10b0   :  { %1114 = vrot.lane.b32.xlu1 %v1113_v15, %s4244_s3 }
0x1122   :  { %v1115_v17 = vpop.permute.xlu1 %1114 }
0x1123   :  { %3453 = vmatmul.mubr.msk.f32.vlgmr.msra.gmra.mrb[6].mxu1 %vm240_vm5, %v1115_v17 }
0x11f6   :  { %v1184_v19 = vpop.f32.mrb[6].mxu1 }
0x11f7   :  { %v1189_v20 = vrot.slane %v1184_v19, 2  ;;  %v1190_v21 = vrot.slane %v1184_v19, 3  ;;  %v3454_v22 = vpop.f32.mrb[7].mxu1 }
0x11f9   :  { %v1193_v23 = vadd.f32 %v1189_v20, %v4472_v18  ;;  %v1194_v24 = vadd.f32 %v1190_v21, %v4470_v14 }
0x11fb   :  { %3901 = vtanh.f32 %v1193_v23  ;;  %v3212_v28 = vmul.f32 -1.442695, %v1193_v23  ;;  %v3213_v29 = vmul.f32 -1.442695, %v1194_v24 }
0x11fc   :  { %3903 = vtanh.f32 %v1194_v24 }
0x11fd   :  { %3905 = vpow2.f32 %v3212_v28 }
0x11fe   :  { %3907 = vpow2.f32 %v3213_v29 }
0x1205   :  { %v3902_v25 = vpop.eup %3901 }
0x1206   :  { %v3904_v26 = vpop.eup %3903  ;;  %1219 = vrot.lane.b32.xlu0 %v3902_v25, %s4243_s16 }
0x1207   :  { %1221 = vrot.lane.b32.xlu1 %v3904_v26, %s4243_s16  ;;  %v3906_v30 = vpop.eup %3905 }
0x1208   :  { %v3908_v31 = vpop.eup %3907  ;;  %v1201_v32 = vadd.f32 1.0, %v3906_v30 }
0x1209   :  { %v1202_v33 = vadd.f32 1.0, %v3908_v31 }
0x120a   :  { %3909 = vrcp.f32 %v1201_v32 }
0x120b   :  { %3911 = vrcp.f32 %v1202_v33  ;;  %v1418_v33 = vld [vmem:[%s4870_s4] sm:$0xff] }
0x1214   :  { %v3910_v34 = vpop.eup %3909 }
0x1215   :  { %v3912_v37 = vpop.eup %3911  ;;  %v1215_v5 = vmul.f32 %v3910_v34, %v1211_v41 }
0x1216   :  { %v1216_v43 = vmul.f32 %v3912_v37, %v1212_v42 }
0x1278   :  { %v1220_v36 = vpop.permute.xlu0 %1219 }
0x1279   :  { %v1222_v38 = vpop.permute.xlu1 %1221  ;;  %v1225_v39 = vmul.f32 %v3910_v34, %v1220_v36  ;;  %v1421_v36 = vld [vmem:[%s4870_s4 + $0x18] sm:$0xff] }
0x127a   :  { %v1226_v40 = vmul.f32 %v3912_v37, %v1222_v38  ;;  %v1415_v38 = vld [vmem:[%s4871_s5 + $0x18] sm:$0xff] }
0x127b   :  { %1229 = vrot.lane.b32.xlu0 %v1225_v39, %s4244_s3 }
0x127c   :  { %1231 = vrot.lane.b32.xlu1 %v1226_v40, %s4244_s3 }
0x12ed   :  { %v1230_v44 = vpop.permute.xlu0 %1229 }
0x12ee   :  { %v1232_v10 = vpop.permute.xlu1 %1231  ;;  %v1235_v45 = vadd.f32 %v1230_v44, %v1215_v5 }
0x12ef   :  { %v1236_v46 = vadd.f32 %v1232_v10, %v1216_v43 }
0x12f0   :  { %3913 = vtanh.f32 %v1235_v45  ;;  %v1359_v22 = vrot.slane %v1235_v45, 7 }
0x12f1   :  { %3915 = vtanh.f32 %v1236_v46  ;;  %v1360_v23 = vrot.slane %v1236_v46, 7 }
0x12fa   :  { %v3914_v47 = vpop.eup %3913 }
0x12fb   :  { %v3916_v48 = vpop.eup %3915  ;;  %1241 = vrot.lane.b32.xlu0 %v3914_v47, %s4243_s16 }
0x12fc   :  { %1243 = vrot.lane.b32.xlu1 %v3916_v48, %s4243_s16 }
0x136d   :  { %v1242_v49 = vpop.permute.xlu0 %1241 }
0x136e   :  { %v1244_v50 = vpop.permute.xlu1 %1243  ;;  %v1247_v52 = vmul.f32 %v3910_v34, %v1242_v49 }
0x136f   :  { %v1248_v53 = vmul.f32 %v3912_v37, %v1244_v50  ;;  %v1414_v37 = vld [vmem:[%s4871_s5 + $0x10] sm:$0xff] }
0x1370   :  { %v1259_v54 = vrot.slane %v1247_v52, 6  ;;  %v4640_v40 = vpack.c.bf16 %v1415_v38, %v1414_v37 }
0x1371   :  { %v1251_v55 = vrot.slane %v1248_v53, 7  ;;  %v1260_v56 = vrot.slane %v1248_v53, 5 }
0x1373   :  { %v1261_v57 = vsel %vm371_vm3, %v1260_v56, %v1259_v54  ;;  %v1253_v58 = vsel %vm1252_vm11, %v1251_v55, %v1247_v52 }
0x1374   :  { %1262 = vrot.lane.b32.xlu0 %v1261_v57, %s4244_s3  ;;  %v3217_v57 = vld [vmem:[%s4872_s6] ss:$0 sm:$0xff] }
0x13e6   :  { %v1263_v59 = vpop.permute.xlu0 %1262 }
0x13e7   :  { %3464 = vmatmul.mubr.msk.f32.vlgmr.msra.gmra.mrb[8].mxu0 %vm240_vm5, %v1263_v59 }
0x13e8   :  { %3485 = vmatprep.mubr.msk.f32.mxu0 %vm4241_vm0, %v4242_v1 }
0x14ba   :  { %v1332_v60 = vpop.f32.mrb[8].mxu0 }
0x14bb   :  { %v1337_v61 = vrot.slane %v1332_v60, 1  ;;  %v1338_v62 = vrot.slane %v1332_v60, 2  ;;  %v3465_v63 = vpop.f32.mrb[9].mxu0 }
0x14bd   :  { %v1341_v2 = vadd.f32 %v1337_v61, %v4472_v18  ;;  %v1342_v3 = vadd.f32 %v1338_v62, %v4470_v14 }
0x14bf   :  { %3917 = vtanh.f32 %v1341_v2  ;;  %v3215_v8 = vmul.f32 -1.442695, %v1341_v2  ;;  %v3216_v9 = vmul.f32 -1.442695, %v1342_v3 }
0x14c0   :  { %3919 = vtanh.f32 %v1342_v3 }
0x14c1   :  { %3921 = vpow2.f32 %v3215_v8 }
0x14c2   :  { %3923 = vpow2.f32 %v3216_v9 }
0x14c9   :  { %v3918_v4 = vpop.eup %3917 }
0x14ca   :  { %v3920_v6 = vpop.eup %3919  ;;  %1367 = vrot.lane.b32.xlu0 %v3918_v4, %s4243_s16 }
0x14cb   :  { %1369 = vrot.lane.b32.xlu1 %v3920_v6, %s4243_s16  ;;  %v3922_v11 = vpop.eup %3921 }
0x14cc   :  { %v3924_v12 = vpop.eup %3923  ;;  %v1349_v13 = vadd.f32 1.0, %v3922_v11 }
0x14cd   :  { %v1350_v15 = vadd.f32 1.0, %v3924_v12 }
0x14ce   :  { %3925 = vrcp.f32 %v1349_v13 }
0x14cf   :  { %3927 = vrcp.f32 %v1350_v15 }
0x14d8   :  { %v3926_v18 = vpop.eup %3925 }
0x14d9   :  { %v3928_v17 = vpop.eup %3927  ;;  %v1363_v24 = vmul.f32 %v3926_v18, %v1359_v22 }
0x14da   :  { %v1364_v25 = vmul.f32 %v3928_v17, %v1360_v23 }
0x153c   :  { %v1368_v14 = vpop.permute.xlu0 %1367 }
0x153d   :  { %v1370_v19 = vpop.permute.xlu1 %1369  ;;  %v1373_v20 = vmul.f32 %v3926_v18, %v1368_v14 }
0x153e   :  { %v1374_v21 = vmul.f32 %v3928_v17, %v1370_v19 }
0x153f   :  { %1377 = vrot.lane.b32.xlu0 %v1373_v20, %s4244_s3 }
0x1540   :  { %1379 = vrot.lane.b32.xlu1 %v1374_v21, %s4244_s3 }
0x15b1   :  { %v1378_v26 = vpop.permute.xlu0 %1377 }
0x15b2   :  { %v1380_v28 = vpop.permute.xlu1 %1379  ;;  %v1383_v29 = vadd.f32 %v1378_v26, %v1363_v24 }
0x15b3   :  { %v1384_v30 = vadd.f32 %v1380_v28, %v1364_v25 }
0x15b4   :  { %3929 = vtanh.f32 %v1383_v29 }
0x15b5   :  { %3931 = vtanh.f32 %v1384_v30 }
0x15be   :  { %v3930_v31 = vpop.eup %3929 }
0x15bf   :  { %v3932_v32 = vpop.eup %3931  ;;  %1389 = vrot.lane.b32.xlu0 %v3930_v31, %s4243_s16 }
0x15c0   :  { %1391 = vrot.lane.b32.xlu1 %v3932_v32, %s4243_s16 }
0x15c3   :  { %662 = vrot.lane.b32.xlu0 %v4521_v7, %s4244_s3  ;;  %v1419_v7 = vld [vmem:[%s4870_s4 + $0x8] sm:$0xff] }
0x15c4   :  { %515 = vrot.lane.b32.xlu1 %v4501_v27, %s4244_s3  ;;  %v3690_v27 = vpack.c.bf16 %v1419_v7, %v1418_v33 }
0x15c6   :  { %3691 = vmatprep.subr.bf16.mxu1 %v3690_v27 }
0x15c7   :  { %958 = vrot.lane.b32.xlu0 %v4558_v35, %s4244_s3  ;;  %v1412_v35 = vld [vmem:[%s4871_s5] sm:$0xff]  ;;  %3693 = vmatpush3.bf16.msra.mxu1 %v3690_v27 }
0x15c8   :  { %810 = vrot.lane.b32.xlu1 %v4540_v51, %s4244_s3  ;;  %v1413_v51 = vld [vmem:[%s4871_s5 + $0x8] sm:$0xff] }
0x15c9   :  { %v4628_v34 = vpack.c.bf16 %v1413_v51, %v1412_v35 }
0x15cb   :  { %1254 = vrot.lane.b32.xlu0 %v1253_v58, %s4244_s3  ;;  %3700 = vmatpush3.bf16.msra.mxu0 %v4628_v34 }
0x15cc   :  { %1106 = vrot.lane.b32.xlu1 %v4577_v16, %s4244_s3  ;;  %v1420_v16 = vld [vmem:[%s4870_s4 + $0x10] sm:$0xff]  ;;  %3701 = vmatprep.subr.bf16.mxu0 %v4240_v0 }
0x15cd   :  { %v3694_v39 = vpack.c.bf16 %v1421_v36, %v1420_v16 }
0x15cf   :  { %3695 = vmatprep.subr.bf16.mxu1 %v3694_v39  ;;  %3703 = vmatpush3.bf16.msra.mxu0 %v4640_v40 }
0x15d0   :  { %3697 = vmatpush3.bf16.msra.mxu1 %v3694_v39  ;;  %3710 = vmatprep.subr.bf16.mxu0 %v4240_v0 }
0x15d1   :  { %3704 = vmatprep.subr.bf16.mxu1 %v4240_v0 }
0x15d2   :  { %3486 = vmatmul.mubr.f32.vlgmr.msra.gmra.mrb[10].mxu0 %v4242_v1 }
0x15d3   :  { %3712 = vmatpush3.bf16.msra.mxu0 %v4628_v34  ;;  %3507 = vmatprep.mubr.msk.f32.mxu0 %vm4241_vm0, %v4242_v1 }
0x15d4   :  { %3713 = vmatprep.subr.bf16.mxu0 %v4240_v0 }
0x15d7   :  { %3715 = vmatpush3.bf16.msra.mxu0 %v4640_v40 }
0x15d8   :  { %3722 = vmatprep.subr.bf16.mxu0 %v4240_v0 }
0x1631   :  { %v1390_v41 = vpop.permute.xlu0 %1389 }
0x1632   :  { %v1392_v42 = vpop.permute.xlu1 %1391  ;;  %v1395_v5 = vmul.f32 %v3926_v18, %v1390_v41 }
0x1633   :  { %v1396_v43 = vmul.f32 %v3928_v17, %v1392_v42 }
0x1634   :  { %1400 = vrot.lane.b32.xlu1 %v1395_v5, %s4244_s3 }
0x1635   :  { %v1399_v44 = vrot.slane %v1396_v43, 7  ;;  %v663_v10 = vpop.permute.xlu0 %662 }
0x1636   :  { %v516_v45 = vpop.permute.xlu1 %515  ;;  %666 = vst.msk [vmem:[#allocation2 + $0x2] sm:$0xc] %vm665_vm12, %v663_v10 }
0x1637   :  { %519 = vst.msk [vmem:[#allocation2 + $0x1] sm:$0x6] %vm518_vm13, %v516_v45  ;;  %1402 = vrot.lane.b32.xlu0 %v1399_v44, %s4244_s3 }
0x1639   :  { %v959_v46 = vpop.permute.xlu0 %958 }
0x163a   :  { %v811_v47 = vpop.permute.xlu1 %810  ;;  %962 = vst.msk [vmem:[#allocation2 + $0x4] sm:$0x30] %vm961_vm14, %v959_v46 }
0x163b   :  { %814 = vst.msk [vmem:[#allocation2 + $0x3] sm:$0x18] %vm813_vm15, %v811_v47 }
0x163d   :  { %v1255_v48 = vpop.permute.xlu0 %1254 }
0x163e   :  { %v1107_v49 = vpop.permute.xlu1 %1106  ;;  %1258 = vst.msk [vmem:[#allocation2 + $0x6] sm:$0xc0] %vm1257_vm1, %v1255_v48 }
0x163f   :  { %1110 = vst.msk [vmem:[#allocation2 + $0x5] sm:$0x60] %vm1109_vm2, %v1107_v49 }
0x1642   :  { %v1416_v50 = vld [vmem:[#allocation2] sm:$0xff] }
0x1643   :  { %3474 = vmatprep.mubr.msk.f32.mxu1 %vm240_vm5, %v1416_v50 }
0x16a5   :  { %v1576_v55 = vpop.f32.mrb[10].mxu0 }
0x16a6   :  { %v1401_v52 = vpop.permute.xlu1 %1400  ;;  %v3487_v56 = vpop.f32.mrb[11].mxu0 }
0x16a7   :  { %1407 = vst.msk [vmem:[#allocation2 + $0x7] sm:$0x80] %vm1406_vm7, %v1401_v52  ;;  %1410 = vst.msk [vmem:[#allocation4 - $0x7] sm:$0x80] %vm1406_vm7, %v1401_v52 }
0x16a9   :  { %v1403_v53 = vpop.permute.xlu0 %1402 }
0x16aa   :  { %1409 = vst.msk [vmem:[#allocation2 + $0xf] sm:$0x1] %vm1408_vm8, %v1403_v53  ;;  %1411 = vst.msk [vmem:[#allocation4 + $0x1] sm:$0x1] %vm1408_vm8, %v1403_v53 }
0x16b1   :  { %v1417_v54 = vld [vmem:[#allocation2 + $0x8] sm:$0xff] }
0x16b2   :  { %3475 = vmatmul.mubr.msk.f32.vlgmr.msra.gmra.mrb[8].mxu1 %vm240_vm5, %v1417_v54 }
0x16b3   :  { %3706 = vmatpush3.bf16.msra.mxu1 %v4628_v34  ;;  %3496 = vmatprep.mubr.msk.f32.mxu1 %vm4241_vm0, %v4242_v1 }
0x16b4   :  { %3707 = vmatprep.subr.bf16.mxu1 %v4240_v0 }
0x16b7   :  { %3709 = vmatpush3.bf16.msra.mxu1 %v4640_v40 }
0x16b8   :  { %3716 = vmatprep.subr.bf16.mxu1 %v4240_v0 }
0x1785   :  { %v3476_v58 = vpop.f32.mrb[8].mxu1 }
0x1786   :  { %v4669_v59 = vadd.f32 %v3476_v58, %v3217_v57  ;;  %v1501_v60 = vpop.f32.mrb[9].mxu1 }
0x1787   :  { %v4671_v61 = vadd.f32 %v3217_v57, %v1501_v60 }
0x1789   :  { %v1580_v62 = vadd.f32 %v1576_v55, %v4671_v61 }
0x178b   :  { %3933 = vtanh.f32 %v1580_v62  ;;  %v3220_v2 = vmul.f32 -1.442695, %v1580_v62 }
0x178d   :  { %3935 = vpow2.f32 %v3220_v2 }
0x1795   :  { %v3934_v63 = vpop.eup %3933 }
0x1796   :  { %1590 = vrot.lane.b32.xlu1 %v3934_v63, %s4243_s16 }
0x1797   :  { %v3936_v3 = vpop.eup %3935 }
0x1798   :  { %v1584_v4 = vadd.f32 1.0, %v3936_v3 }
0x179a   :  { %3937 = vrcp.f32 %v1584_v4 }
0x17a4   :  { %v3938_v6 = vpop.eup %3937 }
0x17a5   :  { %v1588_v11 = vmul.f32 0.0, %v3938_v6 }
0x1808   :  { %v1591_v8 = vpop.permute.xlu1 %1590 }
0x1809   :  { %v1593_v9 = vmul.f32 %v3938_v6, %v1591_v8 }
0x180b   :  { %1595 = vrot.lane.b32.xlu0 %v1593_v9, %s4244_s3 }
0x187d   :  { %v1596_v12 = vpop.permute.xlu0 %1595 }
0x187e   :  { %v1598_v13 = vadd.f32 %v1596_v12, %v1588_v11 }
0x1880   :  { %3939 = vtanh.f32 %v1598_v13  ;;  %v1692_v31 = vrot.slane %v1598_v13, 6 }
0x188a   :  { %v3940_v15 = vpop.eup %3939 }
0x188b   :  { %1601 = vrot.lane.b32.xlu1 %v3940_v15, %s4243_s16 }
0x18fd   :  { %v1602_v18 = vpop.permute.xlu1 %1601 }
0x18fe   :  { %v1604_v14 = vmul.f32 %v3938_v6, %v1602_v18 }
0x1900   :  { %1606 = vrot.lane.b32.xlu0 %v1604_v14, %s4244_s3 }
0x1972   :  { %v1607_v17 = vpop.permute.xlu0 %1606 }
0x1973   :  { %3497 = vmatmul.mubr.msk.f32.vlgmr.msra.gmra.mrb[10].mxu1 %vm240_vm5, %v1607_v17 }
0x1974   :  { %3718 = vmatpush3.bf16.msra.mxu1 %v4628_v34  ;;  %3518 = vmatprep.mubr.msk.f32.mxu1 %vm4241_vm0, %v4242_v1 }
0x1975   :  { %3719 = vmatprep.subr.bf16.mxu1 %v4240_v0 }
0x1978   :  { %3721 = vmatpush3.bf16.msra.mxu1 %v4640_v40 }
0x1979   :  { %3728 = vmatprep.subr.bf16.mxu1 %v4240_v0 }
0x1a46   :  { %v1676_v19 = vpop.f32.mrb[10].mxu1 }
0x1a47   :  { %v1681_v20 = vrot.slane %v1676_v19, 6  ;;  %v3498_v21 = vpop.f32.mrb[11].mxu1 }
0x1a49   :  { %v1683_v22 = vadd.f32 %v1681_v20, %v4671_v61 }
0x1a4b   :  { %3941 = vtanh.f32 %v1683_v22  ;;  %v3222_v24 = vmul.f32 -1.442695, %v1683_v22 }
0x1a4d   :  { %3943 = vpow2.f32 %v3222_v24 }
0x1a55   :  { %v3942_v23 = vpop.eup %3941 }
0x1a56   :  { %1696 = vrot.lane.b32.xlu1 %v3942_v23, %s4243_s16 }
0x1a57   :  { %v3944_v25 = vpop.eup %3943 }
0x1a58   :  { %v1687_v26 = vadd.f32 1.0, %v3944_v25 }
0x1a5a   :  { %3945 = vrcp.f32 %v1687_v26 }
0x1a64   :  { %v3946_v28 = vpop.eup %3945 }
0x1a65   :  { %v1694_v32 = vmul.f32 %v3946_v28, %v1692_v31 }
0x1ac8   :  { %v1697_v29 = vpop.permute.xlu1 %1696 }
0x1ac9   :  { %v1699_v30 = vmul.f32 %v3946_v28, %v1697_v29 }
0x1acb   :  { %1701 = vrot.lane.b32.xlu0 %v1699_v30, %s4244_s3 }
0x1b3d   :  { %v1702_v33 = vpop.permute.xlu0 %1701 }
0x1b3e   :  { %v1704_v7 = vadd.f32 %v1702_v33, %v1694_v32 }
0x1b40   :  { %3947 = vtanh.f32 %v1704_v7  ;;  %v1799_v47 = vrot.slane %v1704_v7, 6 }
0x1b4a   :  { %v3948_v27 = vpop.eup %3947 }
0x1b4b   :  { %1707 = vrot.lane.b32.xlu1 %v3948_v27, %s4243_s16 }
0x1bbd   :  { %v1708_v35 = vpop.permute.xlu1 %1707 }
0x1bbe   :  { %v1710_v51 = vmul.f32 %v3946_v28, %v1708_v35 }
0x1bc0   :  { %v1712_v16 = vrot.slane %v1710_v51, 2 }
0x1bc2   :  { %1713 = vrot.lane.b32.xlu0 %v1712_v16, %s4244_s3 }
0x1c34   :  { %v1714_v36 = vpop.permute.xlu0 %1713 }
0x1c35   :  { %3508 = vmatmul.mubr.msk.f32.vlgmr.msra.gmra.mrb[12].mxu0 %vm240_vm5, %v1714_v36 }
0x1c36   :  { %3724 = vmatpush3.bf16.msra.mxu0 %v4628_v34  ;;  %3529 = vmatprep.mubr.msk.f32.mxu0 %vm4241_vm0, %v4242_v1 }
0x1c37   :  { %3725 = vmatprep.subr.bf16.mxu0 %v4240_v0 }
0x1c3a   :  { %3727 = vmatpush3.bf16.msra.mxu0 %v4640_v40 }
0x1c3b   :  { %3734 = vmatprep.subr.bf16.mxu0 %v4240_v0 }
0x1d08   :  { %v1783_v37 = vpop.f32.mrb[12].mxu0 }
0x1d09   :  { %v1788_v38 = vrot.slane %v1783_v37, 4  ;;  %v3509_v39 = vpop.f32.mrb[13].mxu0 }
0x1d0b   :  { %v1790_v41 = vadd.f32 %v1788_v38, %v4671_v61 }
0x1d0d   :  { %3949 = vtanh.f32 %v1790_v41  ;;  %v3224_v5 = vmul.f32 -1.442695, %v1790_v41 }
0x1d0f   :  { %3951 = vpow2.f32 %v3224_v5 }
0x1d17   :  { %v3950_v42 = vpop.eup %3949 }
0x1d18   :  { %1803 = vrot.lane.b32.xlu1 %v3950_v42, %s4243_s16 }
0x1d19   :  { %v3952_v43 = vpop.eup %3951 }
0x1d1a   :  { %v1794_v44 = vadd.f32 1.0, %v3952_v43 }
0x1d1c   :  { %3953 = vrcp.f32 %v1794_v44 }
0x1d26   :  { %v3954_v10 = vpop.eup %3953 }
0x1d27   :  { %v1801_v48 = vmul.f32 %v3954_v10, %v1799_v47 }
0x1d8a   :  { %v1804_v45 = vpop.permute.xlu1 %1803 }
0x1d8b   :  { %v1806_v46 = vmul.f32 %v3954_v10, %v1804_v45 }
0x1d8d   :  { %1808 = vrot.lane.b32.xlu0 %v1806_v46, %s4244_s3 }
0x1dff   :  { %v1809_v49 = vpop.permute.xlu0 %1808 }
0x1e00   :  { %v1811_v50 = vadd.f32 %v1809_v49, %v1801_v48 }
0x1e02   :  { %3955 = vtanh.f32 %v1811_v50  ;;  %v1906_v11 = vrot.slane %v1811_v50, 6 }
0x1e0c   :  { %v3956_v52 = vpop.eup %3955 }
0x1e0d   :  { %1814 = vrot.lane.b32.xlu1 %v3956_v52, %s4243_s16 }
0x1e7f   :  { %v1815_v53 = vpop.permute.xlu1 %1814 }
0x1e80   :  { %v1817_v54 = vmul.f32 %v3954_v10, %v1815_v53 }
0x1e82   :  { %v1819_v55 = vrot.slane %v1817_v54, 4 }
0x1e84   :  { %1820 = vrot.lane.b32.xlu0 %v1819_v55, %s4244_s3 }
0x1ef6   :  { %v1821_v56 = vpop.permute.xlu0 %1820 }
0x1ef7   :  { %3519 = vmatmul.mubr.msk.f32.vlgmr.msra.gmra.mrb[12].mxu1 %vm240_vm5, %v1821_v56 }
0x1ef8   :  { %3730 = vmatpush3.bf16.msra.mxu1 %v4628_v34  ;;  %3540 = vmatprep.mubr.msk.f32.mxu1 %vm4241_vm0, %v4242_v1 }
0x1ef9   :  { %3731 = vmatprep.subr.bf16.mxu1 %v4240_v0 }
0x1efc   :  { %3733 = vmatpush3.bf16.msra.mxu1 %v4640_v40 }
0x1efd   :  { %3740 = vmatprep.subr.bf16.mxu1 %v4240_v0 }
0x1fca   :  { %v1890_v57 = vpop.f32.mrb[12].mxu1 }
0x1fcb   :  { %v1895_v58 = vrot.slane %v1890_v57, 2  ;;  %v3520_v60 = vpop.f32.mrb[13].mxu1 }
0x1fcd   :  { %v1897_v62 = vadd.f32 %v1895_v58, %v4671_v61 }
0x1fcf   :  { %3957 = vtanh.f32 %v1897_v62  ;;  %v3226_v2 = vmul.f32 -1.442695, %v1897_v62 }
0x1fd1   :  { %3959 = vpow2.f32 %v3226_v2 }
0x1fd9   :  { %v3958_v63 = vpop.eup %3957 }
0x1fda   :  { %1910 = vrot.lane.b32.xlu1 %v3958_v63, %s4243_s16 }
0x1fdb   :  { %v3960_v3 = vpop.eup %3959 }
0x1fdc   :  { %v1901_v4 = vadd.f32 1.0, %v3960_v3 }
0x1fde   :  { %3961 = vrcp.f32 %v1901_v4 }
0x1fe8   :  { %v3962_v6 = vpop.eup %3961 }
0x1fe9   :  { %v1908_v12 = vmul.f32 %v3962_v6, %v1906_v11 }
0x204c   :  { %v1911_v8 = vpop.permute.xlu1 %1910 }
0x204d   :  { %v1913_v9 = vmul.f32 %v3962_v6, %v1911_v8 }
0x204f   :  { %1915 = vrot.lane.b32.xlu0 %v1913_v9, %s4244_s3 }
0x20c1   :  { %v1916_v13 = vpop.permute.xlu0 %1915 }
0x20c2   :  { %v1918_v15 = vadd.f32 %v1916_v13, %v1908_v12 }
0x20c4   :  { %3963 = vtanh.f32 %v1918_v15  ;;  %v2010_v31 = vrot.slane %v1918_v15, 6 }
0x20ce   :  { %v3964_v61 = vpop.eup %3963 }
0x20cf   :  { %1921 = vrot.lane.b32.xlu1 %v3964_v61, %s4243_s16 }
0x2141   :  { %v1922_v18 = vpop.permute.xlu1 %1921 }
0x2142   :  { %v1924_v14 = vmul.f32 %v3962_v6, %v1922_v18 }
0x2144   :  { %v1926_v17 = vrot.slane %v1924_v14, 6 }
0x2146   :  { %1927 = vrot.lane.b32.xlu0 %v1926_v17, %s4244_s3 }
0x21b8   :  { %v1928_v19 = vpop.permute.xlu0 %1927 }
0x21b9   :  { %3530 = vmatmul.mubr.msk.f32.vlgmr.msra.gmra.mrb[14].mxu0 %vm240_vm5, %v1928_v19 }
0x21ba   :  { %3736 = vmatpush3.bf16.msra.mxu0 %v4628_v34  ;;  %3551 = vmatprep.mubr.msk.f32.mxu0 %vm4241_vm0, %v4242_v1 }
0x21bb   :  { %3737 = vmatprep.subr.bf16.mxu0 %v4240_v0 }
0x21be   :  { %3739 = vmatpush3.bf16.msra.mxu0 %v4640_v40 }
0x21bf   :  { %3746 = vmatprep.subr.bf16.mxu0 %v4240_v0 }
0x228c   :  { %v1997_v20 = vpop.f32.mrb[14].mxu0 }
0x228d   :  { %v2001_v21 = vadd.f32 %v1997_v20, %v4669_v59  ;;  %v3531_v22 = vpop.f32.mrb[15].mxu0 }
0x228f   :  { %3965 = vtanh.f32 %v2001_v21  ;;  %v3228_v24 = vmul.f32 -1.442695, %v2001_v21 }
0x2291   :  { %3967 = vpow2.f32 %v3228_v24 }
0x2299   :  { %v3966_v23 = vpop.eup %3965 }
0x229a   :  { %2014 = vrot.lane.b32.xlu1 %v3966_v23, %s4243_s16 }
0x229b   :  { %v3968_v25 = vpop.eup %3967 }
0x229c   :  { %v2005_v26 = vadd.f32 1.0, %v3968_v25 }
0x229e   :  { %3969 = vrcp.f32 %v2005_v26 }
0x22a8   :  { %v3970_v28 = vpop.eup %3969 }
0x22a9   :  { %v2012_v32 = vmul.f32 %v3970_v28, %v2010_v31 }
0x230c   :  { %v2015_v29 = vpop.permute.xlu1 %2014 }
0x230d   :  { %v2017_v30 = vmul.f32 %v3970_v28, %v2015_v29 }
0x230f   :  { %2019 = vrot.lane.b32.xlu0 %v2017_v30, %s4244_s3 }
0x2381   :  { %v2020_v33 = vpop.permute.xlu0 %2019 }
0x2382   :  { %v2022_v7 = vadd.f32 %v2020_v33, %v2012_v32  ;;  %v2359_v33 = vld [vmem:[#allocation8] sm:$0xff] }
0x2384   :  { %3971 = vtanh.f32 %v2022_v7 }
0x238e   :  { %v3972_v27 = vpop.eup %3971 }
0x238f   :  { %2025 = vrot.lane.b32.xlu1 %v3972_v27, %s4243_s16 }
0x2401   :  { %v2026_v35 = vpop.permute.xlu1 %2025 }
0x2402   :  { %v2028_v51 = vmul.f32 %v3970_v28, %v2026_v35  ;;  %v2355_v35 = vld [vmem:[#allocation10] sm:$0xff] }
0x2404   :  { %2030 = vrot.lane.b32.xlu0 %v2028_v51, %s4244_s3  ;;  %v2356_v51 = vld [vmem:[#allocation10 + $0x8] sm:$0xff] }
0x2476   :  { %v2031_v16 = vpop.permute.xlu0 %2030 }
0x2477   :  { %3541 = vmatmul.mubr.msk.f32.vlgmr.msra.gmra.mrb[14].mxu1 %vm240_vm5, %v2031_v16  ;;  %v3753_v16 = vpack.c.bf16 %v2356_v51, %v2355_v35 }
0x2478   :  { %3742 = vmatpush3.bf16.msra.mxu1 %v4628_v34  ;;  %3562 = vmatprep.mubr.msk.f32.mxu1 %vm4241_vm0, %v4242_v1 }
0x2479   :  { %3743 = vmatprep.subr.bf16.mxu1 %v4240_v0 }
0x247c   :  { %3745 = vmatpush3.bf16.msra.mxu1 %v4640_v40  ;;  %v2116_v40 = vrot.slane %v2022_v7, 6  ;;  %v2360_v7 = vld [vmem:[#allocation8 + $0x8] sm:$0xff] }
0x247d   :  { %3752 = vmatprep.subr.bf16.mxu1 %v4240_v0  ;;  %v3747_v27 = vpack.c.bf16 %v2360_v7, %v2359_v33 }
0x254a   :  { %v2100_v36 = vpop.f32.mrb[14].mxu1 }
0x254b   :  { %v2105_v37 = vrot.slane %v2100_v36, 6  ;;  %v3542_v38 = vpop.f32.mrb[15].mxu1  ;;  %v2361_v36 = vld [vmem:[#allocation8 + $0x10] sm:$0xff] }
0x254c   :  { %v2357_v38 = vld [vmem:[#allocation10 + $0x10] sm:$0xff] }
0x254d   :  { %v2107_v39 = vadd.f32 %v2105_v37, %v4669_v59  ;;  %v2362_v37 = vld [vmem:[#allocation8 + $0x18] sm:$0xff] }
0x254f   :  { %3973 = vtanh.f32 %v2107_v39  ;;  %v3230_v42 = vmul.f32 -1.442695, %v2107_v39  ;;  %v3750_v39 = vpack.c.bf16 %v2362_v37, %v2361_v36 }
0x2551   :  { %3975 = vpow2.f32 %v3230_v42 }
0x2559   :  { %v3974_v41 = vpop.eup %3973 }
0x255a   :  { %2120 = vrot.lane.b32.xlu1 %v3974_v41, %s4243_s16  ;;  %v2358_v41 = vld [vmem:[#allocation10 + $0x18] sm:$0xff] }
0x255b   :  { %v3976_v34 = vpop.eup %3975  ;;  %v3756_v42 = vpack.c.bf16 %v2358_v41, %v2357_v38 }
0x255c   :  { %v2111_v5 = vadd.f32 1.0, %v3976_v34 }
0x255e   :  { %3977 = vrcp.f32 %v2111_v5 }
0x2568   :  { %v3978_v43 = vpop.eup %3977 }
0x2569   :  { %v2118_v45 = vmul.f32 %v3978_v43, %v2116_v40 }
0x25cc   :  { %v2121_v44 = vpop.permute.xlu1 %2120 }
0x25cd   :  { %v2123_v10 = vmul.f32 %v3978_v43, %v2121_v44 }
0x25cf   :  { %2125 = vrot.lane.b32.xlu0 %v2123_v10, %s4244_s3 }
0x2641   :  { %v2126_v46 = vpop.permute.xlu0 %2125 }
0x2642   :  { %v2128_v47 = vadd.f32 %v2126_v46, %v2118_v45  ;;  %v4245_v45 = vmov 1983009808  }
0x2643   :  { %v2445_v46 = vunpack.c.l.s4 %v4245_v45 }
0x2644   :  { %3979 = vtanh.f32 %v2128_v47  ;;  %v2223_v6 = vrot.slane %v2128_v47, 6  ;;  %v2447_v47 = vlaneseq }
0x264e   :  { %v3980_v48 = vpop.eup %3979 }
0x264f   :  { %2131 = vrot.lane.b32.xlu1 %v3980_v48, %s4243_s16  ;;  %v2446_v48 = vunpack.c.0.s8 %v2445_v46 }
0x26c1   :  { %v2132_v49 = vpop.permute.xlu1 %2131 }
0x26c2   :  { %v2134_v50 = vmul.f32 %v3978_v43, %v2132_v49  ;;  %v4767_v49 = vshrl.u32 %v2447_v47, 7 }
0x26c4   :  { %v2136_v52 = vrot.slane %v2134_v50, 2  ;;  %v4770_v50 = vsub.s32 %v2446_v48, %v4767_v49 }
0x26c6   :  { %2137 = vrot.lane.b32.xlu0 %v2136_v52, %s4244_s3  ;;  %v3235_v52 = vld [vmem:[#allocation11] ss:$0 sm:$0xff] }
0x2738   :  { %v2138_v53 = vpop.permute.xlu0 %2137 }
0x2739   :  { %3552 = vmatmul.mubr.msk.f32.vlgmr.msra.gmra.mrb[16].mxu0 %vm240_vm5, %v2138_v53 }
0x273a   :  { %3573 = vmatprep.mubr.msk.f32.mxu0 %vm4241_vm0, %v4242_v1  ;;  %3748 = vmatpush3.bf16.msra.mxu0 %v3747_v27 }
0x273b   :  { %3749 = vmatprep.subr.bf16.mxu0 %v4240_v0 }
0x273e   :  { %3751 = vmatpush3.bf16.msra.mxu0 %v3750_v39 }
0x273f   :  { %3758 = vmatprep.subr.bf16.mxu0 %v4240_v0 }
0x280c   :  { %v2207_v54 = vpop.f32.mrb[16].mxu0 }
0x280d   :  { %v2212_v55 = vrot.slane %v2207_v54, 4  ;;  %v3553_v56 = vpop.f32.mrb[17].mxu0 }
0x280f   :  { %v2214_v57 = vadd.f32 %v2212_v55, %v4669_v59 }
0x2811   :  { %3981 = vtanh.f32 %v2214_v57  ;;  %v3232_v60 = vmul.f32 -1.442695, %v2214_v57 }
0x2813   :  { %3983 = vpow2.f32 %v3232_v60 }
0x281b   :  { %v3982_v58 = vpop.eup %3981 }
0x281c   :  { %2227 = vrot.lane.b32.xlu1 %v3982_v58, %s4243_s16 }
0x281d   :  { %v3984_v62 = vpop.eup %3983 }
0x281e   :  { %v2218_v63 = vadd.f32 1.0, %v3984_v62 }
0x2820   :  { %3985 = vrcp.f32 %v2218_v63 }
0x282a   :  { %v3986_v2 = vpop.eup %3985 }
0x282b   :  { %v2225_v8 = vmul.f32 %v3986_v2, %v2223_v6 }
0x288e   :  { %v2228_v3 = vpop.permute.xlu1 %2227 }
0x288f   :  { %v2230_v4 = vmul.f32 %v3986_v2, %v2228_v3 }
0x2891   :  { %2232 = vrot.lane.b32.xlu0 %v2230_v4, %s4244_s3 }
0x2903   :  { %v2233_v9 = vpop.permute.xlu0 %2232 }
0x2904   :  { %v2235_v11 = vadd.f32 %v2233_v9, %v2225_v8 }
0x2906   :  { %3987 = vtanh.f32 %v2235_v11  ;;  %v2330_v29 = vrot.slane %v2235_v11, 6 }
0x2910   :  { %v3988_v12 = vpop.eup %3987 }
0x2911   :  { %2238 = vrot.lane.b32.xlu1 %v3988_v12, %s4243_s16 }
0x2983   :  { %v2239_v13 = vpop.permute.xlu1 %2238 }
0x2984   :  { %v2241_v15 = vmul.f32 %v3986_v2, %v2239_v13 }
0x2986   :  { %v2243_v61 = vrot.slane %v2241_v15, 4 }
0x2988   :  { %2244 = vrot.lane.b32.xlu0 %v2243_v61, %s4244_s3 }
0x29fa   :  { %v2245_v18 = vpop.permute.xlu0 %2244 }
0x29fb   :  { %3563 = vmatmul.mubr.msk.f32.vlgmr.msra.gmra.mrb[16].mxu1 %vm240_vm5, %v2245_v18 }
0x29fc   :  { %3584 = vmatprep.mubr.msk.f32.mxu1 %vm4241_vm0, %v4242_v1  ;;  %3754 = vmatpush3.bf16.msra.mxu1 %v3753_v16 }
0x29fd   :  { %3755 = vmatprep.subr.bf16.mxu1 %v4240_v0 }
0x2a00   :  { %3757 = vmatpush3.bf16.msra.mxu1 %v3756_v42 }
0x2a01   :  { %3764 = vmatprep.subr.bf16.mxu1 %v4240_v0 }
0x2a03   :  { %3585 = vmatmul.mubr.f32.vlgmr.msra.gmra.mrb[18].mxu1 %v4242_v1 }
0x2a04   :  { %3606 = vmatprep.mubr.msk.f32.mxu1 %vm4241_vm0, %v4242_v1 }
0x2ace   :  { %v2314_v14 = vpop.f32.mrb[16].mxu1 }
0x2acf   :  { %v2319_v17 = vrot.slane %v2314_v14, 2  ;;  %v3564_v19 = vpop.f32.mrb[17].mxu1 }
0x2ad1   :  { %v2321_v20 = vadd.f32 %v2319_v17, %v4669_v59 }
0x2ad3   :  { %3989 = vtanh.f32 %v2321_v20  ;;  %v3234_v22 = vmul.f32 -1.442695, %v2321_v20 }
0x2ad5   :  { %3991 = vpow2.f32 %v3234_v22 }
0x2ad6   :  { %v2520_v10 = vpop.f32.mrb[18].mxu1 }
0x2ad7   :  { %v3586_v40 = vpop.f32.mrb[19].mxu1  ;;  %v2531_v53 = vrot.slane %v2520_v10, %v4770_v50 }
0x2ad9   :  { %v2532_v58 = vrot.slane %v2531_v53, 1 }
0x2add   :  { %v3990_v21 = vpop.eup %3989 }
0x2ade   :  { %2334 = vrot.lane.b32.xlu1 %v3990_v21, %s4243_s16 }
0x2adf   :  { %v3992_v23 = vpop.eup %3991 }
0x2ae0   :  { %v2325_v24 = vadd.f32 1.0, %v3992_v23 }
0x2ae2   :  { %3993 = vrcp.f32 %v2325_v24 }
0x2aec   :  { %v3994_v25 = vpop.eup %3993 }
0x2aed   :  { %v2332_v30 = vmul.f32 %v3994_v25, %v2330_v29  ;;  %v4781_v29 = vsub.s32 0, %v4767_v49 }
0x2b50   :  { %v2335_v26 = vpop.permute.xlu1 %2334 }
0x2b51   :  { %v2337_v28 = vmul.f32 %v3994_v25, %v2335_v26 }
0x2b53   :  { %2339 = vrot.lane.b32.xlu0 %v2337_v28, %s4244_s3 }
0x2bc5   :  { %v2340_v31 = vpop.permute.xlu0 %2339 }
0x2bc6   :  { %v2342_v32 = vadd.f32 %v2340_v31, %v2332_v30 }
0x2bc8   :  { %3995 = vtanh.f32 %v2342_v32 }
0x2bd2   :  { %v3996_v59 = vpop.eup %3995 }
0x2bd3   :  { %2345 = vrot.lane.b32.xlu1 %v3996_v59, %s4243_s16 }
0x2c45   :  { %v2346_v34 = vpop.permute.xlu1 %2345 }
0x2c46   :  { %v2348_v5 = vmul.f32 %v3994_v25, %v2346_v34 }
0x2c48   :  { %2350 = vrot.lane.b32.xlu0 %v2348_v5, %s4244_s3 }
0x2cba   :  { %v2351_v43 = vpop.permute.xlu0 %2350 }
0x2cbb   :  { %2353 = vst.msk [vmem:[#allocation4 - $0x4] sm:$0xc0] %vm1257_vm1, %v2351_v43 }
0x2cc2   :  { %v2354_v44 = vld [vmem:[#allocation4] sm:$0xf] }
0x2cc3   :  { %3574 = vmatmul.mubr.msk.f32.vlgmr.msra.gmra.mrb[18].mxu0 %vm240_vm5, %v2354_v44 }
0x2cc4   :  { %3760 = vmatpush3.bf16.msra.mxu0 %v3753_v16  ;;  %3595 = vmatprep.mubr.msk.f32.mxu0 %vm4241_vm0, %v4242_v1 }
0x2cc5   :  { %3761 = vmatprep.subr.bf16.mxu0 %v4240_v0 }
0x2cc8   :  { %3763 = vmatpush3.bf16.msra.mxu0 %v3756_v42 }
0x2cc9   :  { %3770 = vmatprep.subr.bf16.mxu0 %v4240_v0 }
0x2d96   :  { %v2439_v54 = vpop.f32.mrb[18].mxu0 }
0x2d97   :  { %v2440_v55 = vadd.f32 %v3235_v52, %v2439_v54  ;;  %v3575_v56 = vpop.f32.mrb[19].mxu0 }
0x2d99   :  { %v2450_v57 = vrot.slane %v2440_v55, %v4770_v50 }
0x2d9b   :  { %v2451_v60 = vcombine.high %v2450_v57, %v2450_v57  ;;  %v2535_v62 = vadd.f32 %v2531_v53, %v2450_v57 }
0x2d9d   :  { %v2536_v63 = vadd.f32 %v2532_v58, %v2451_v60  ;;  %3997 = vtanh.f32 %v2535_v62  ;;  %v3237_v4 = vmul.f32 -1.442695, %v2535_v62 }
0x2d9f   :  { %3999 = vtanh.f32 %v2536_v63  ;;  %v3238_v6 = vmul.f32 -1.442695, %v2536_v63 }
0x2da0   :  { %4001 = vpow2.f32 %v3237_v4  ;;  %v2760_v4 = vld [vmem:[#allocation13 + $0x8] sm:$0xff] }
0x2da1   :  { %4003 = vpow2.f32 %v3238_v6 }
0x2da7   :  { %v3998_v2 = vpop.eup %3997 }
0x2da8   :  { %2555 = vrot.lane.b32.xlu1 %v3998_v2, %s4243_s16 }
0x2da9   :  { %v4000_v3 = vpop.eup %3999 }
0x2daa   :  { %2557 = vrot.lane.b32.xlu0 %v4000_v3, %s4243_s16  ;;  %v4002_v8 = vpop.eup %4001  ;;  %v2759_v3 = vld [vmem:[#allocation13] sm:$0xff] }
0x2dab   :  { %v4004_v9 = vpop.eup %4003  ;;  %v2543_v11 = vadd.f32 1.0, %v4002_v8  ;;  %v3765_v6 = vpack.c.bf16 %v2760_v4, %v2759_v3  ;;  %v2754_v8 = vld [vmem:[#allocation14] sm:$0xff]  ;;  %v3054_v4 = vld [vmem:[%s4879_s13 + $0x10] sm:$0xff] }
0x2dac   :  { %v2544_v12 = vadd.f32 1.0, %v4004_v9  ;;  %v2755_v9 = vld [vmem:[#allocation14 + $0x8] sm:$0xff] }
0x2dad   :  { %4005 = vrcp.f32 %v2543_v11  ;;  %v3771_v11 = vpack.c.bf16 %v2755_v9, %v2754_v8  ;;  %3766 = vmatpush3.bf16.msra.mxu1 %v3765_v6  ;;  %v3055_v6 = vld [vmem:[%s4879_s13 + $0x18] sm:$0xff] }
0x2dae   :  { %4007 = vrcp.f32 %v2544_v12  ;;  %v2761_v12 = vld [vmem:[#allocation13 + $0x10] sm:$0xff]  ;;  %3767 = vmatprep.subr.bf16.mxu1 %v4240_v0  ;;  %v3786_v8 = vpack.c.bf16 %v3055_v6, %v3054_v4 }
0x2db7   :  { %v4006_v13 = vpop.eup %4005 }
0x2db8   :  { %v4008_v18 = vpop.eup %4007  ;;  %v2551_v19 = vmul.f32 0.0, %v4006_v13 }
0x2db9   :  { %v2552_v22 = vmul.f32 0.0, %v4008_v18 }
0x2e1a   :  { %v2556_v15 = vpop.permute.xlu1 %2555 }
0x2e1b   :  { %v2561_v61 = vmul.f32 %v4006_v13, %v2556_v15  ;;  %v2756_v15 = vld [vmem:[#allocation14 + $0x10] sm:$0xff] }
0x2e1c   :  { %v2558_v14 = vpop.permute.xlu0 %2557 }
0x2e1d   :  { %2565 = vrot.lane.b32.xlu1 %v2561_v61, %s4244_s3  ;;  %v2562_v17 = vmul.f32 %v4008_v18, %v2558_v14 }
0x2e1f   :  { %2567 = vrot.lane.b32.xlu0 %v2562_v17, %s4244_s3 }
0x2e8f   :  { %v2566_v20 = vpop.permute.xlu1 %2565 }
0x2e90   :  { %v2571_v21 = vadd.f32 %v2566_v20, %v2551_v19  ;;  %v4801_v19 = vsub.s32 1, %v4767_v49 }
0x2e91   :  { %v2568_v23 = vpop.permute.xlu0 %2567 }
0x2e92   :  { %4009 = vtanh.f32 %v2571_v21  ;;  %v2572_v24 = vadd.f32 %v2568_v23, %v2552_v22  ;;  %v2701_v55 = vrot.slane %v2571_v21, 7 }
0x2e94   :  { %4011 = vtanh.f32 %v2572_v24  ;;  %v2702_v53 = vrot.slane %v2572_v24, 7 }
0x2e9c   :  { %v4010_v25 = vpop.eup %4009 }
0x2e9d   :  { %2577 = vrot.lane.b32.xlu1 %v4010_v25, %s4243_s16 }
0x2e9e   :  { %v4012_v26 = vpop.eup %4011 }
0x2e9f   :  { %2579 = vrot.lane.b32.xlu0 %v4012_v26, %s4243_s16 }
0x2f0f   :  { %v2578_v28 = vpop.permute.xlu1 %2577 }
0x2f10   :  { %v2583_v30 = vmul.f32 %v4006_v13, %v2578_v28  ;;  %v2762_v13 = vld [vmem:[#allocation13 + $0x18] sm:$0xff] }
0x2f11   :  { %v2580_v31 = vpop.permute.xlu0 %2579  ;;  %v3768_v61 = vpack.c.bf16 %v2762_v13, %v2761_v12 }
0x2f12   :  { %v2584_v32 = vmul.f32 %v4008_v18, %v2580_v31  ;;  %v2590_v59 = vrot.slane %v2583_v30, %v4781_v29  ;;  %v2757_v18 = vld [vmem:[#allocation14 + $0x18] sm:$0xff]  ;;  %v3242_v31 = vld [vmem:[#allocation16] ss:$0 sm:$0xff] }
0x2f13   :  { %v3774_v14 = vpack.c.bf16 %v2757_v18, %v2756_v15  ;;  %3769 = vmatpush3.bf16.msra.mxu1 %v3768_v61  ;;  %v3247_v15 = vld [vmem:[%s4880_s14] ss:$0 sm:$0xff] }
0x2f14   :  { %v2594_v33 = vrot.slane %v2584_v32, %v4781_v29  ;;  %3776 = vmatprep.subr.bf16.mxu1 %v4240_v0 }
0x2f16   :  { %v2595_v7 = vsel %vm371_vm3, %v2594_v33, %v2590_v59 }
0x2f17   :  { %2596 = vrot.lane.b32.xlu1 %v2595_v7, %s4244_s3 }
0x2f89   :  { %v2597_v27 = vpop.permute.xlu1 %2596 }
0x2f8a   :  { %2599 = vst.msk [vmem:[#allocation2] sm:$0x3] %vm376_vm4, %v2597_v27  ;;  %3596 = vmatmul.mubr.msk.f32.vlgmr.msra.gmra.mrb[20].mxu0 %vm240_vm5, %v2597_v27 }
0x2f8b   :  { %3617 = vmatprep.mubr.msk.f32.mxu0 %vm4241_vm0, %v4242_v1  ;;  %3772 = vmatpush3.bf16.msra.mxu0 %v3771_v11 }
0x2f8c   :  { %3773 = vmatprep.subr.bf16.mxu0 %v4240_v0 }
0x2f8f   :  { %3775 = vmatpush3.bf16.msra.mxu0 %v3774_v14 }
0x2f90   :  { %3782 = vmatprep.subr.bf16.mxu0 %v4240_v0 }
0x2f92   :  { %3618 = vmatmul.mubr.f32.vlgmr.msra.gmra.mrb[22].mxu0 %v4242_v1 }
0x2f93   :  { %3639 = vmatprep.mubr.msk.f32.mxu0 %vm4241_vm0, %v4242_v1 }
0x305d   :  { %v2668_v35 = vpop.f32.mrb[20].mxu0 }
0x305e   :  { %v2679_v51 = vrot.slane %v2668_v35, %v4770_v50  ;;  %v3597_v16 = vpop.f32.mrb[21].mxu0 }
0x3060   :  { %v2680_v36 = vrot.slane %v2679_v51, 7  ;;  %v2684_v37 = vadd.f32 %v2679_v51, %v2451_v60 }
0x3062   :  { %v2683_v38 = vadd.f32 %v2680_v36, %v2450_v57  ;;  %4013 = vtanh.f32 %v2684_v37  ;;  %v3241_v42 = vmul.f32 -1.442695, %v2684_v37 }
0x3064   :  { %4015 = vtanh.f32 %v2683_v38  ;;  %v3240_v34 = vmul.f32 -1.442695, %v2683_v38 }
0x3065   :  { %4017 = vpow2.f32 %v3241_v42  ;;  %v2909_v28 = vpop.f32.mrb[22].mxu0 }
0x3066   :  { %4019 = vpow2.f32 %v3240_v34  ;;  %v3619_v30 = vpop.f32.mrb[23].mxu0 }
0x306c   :  { %v4014_v39 = vpop.eup %4013 }
0x306d   :  { %2711 = vrot.lane.b32.xlu1 %v4014_v39, %s4243_s16 }
0x306e   :  { %v4016_v41 = vpop.eup %4015 }
0x306f   :  { %2709 = vrot.lane.b32.xlu0 %v4016_v41, %s4243_s16  ;;  %v4018_v5 = vpop.eup %4017 }
0x3070   :  { %v4020_v43 = vpop.eup %4019  ;;  %v2692_v44 = vadd.f32 1.0, %v4018_v5 }
0x3071   :  { %v2691_v10 = vadd.f32 1.0, %v4020_v43 }
0x3072   :  { %4021 = vrcp.f32 %v2692_v44 }
0x3073   :  { %4023 = vrcp.f32 %v2691_v10 }
0x307c   :  { %v4022_v40 = vpop.eup %4021 }
0x307d   :  { %v4024_v47 = vpop.eup %4023  ;;  %v2706_v54 = vmul.f32 %v4022_v40, %v2702_v53 }
0x307e   :  { %v2705_v58 = vmul.f32 %v4024_v47, %v2701_v55 }
0x30df   :  { %v2712_v45 = vpop.permute.xlu1 %2711 }
0x30e0   :  { %v2716_v46 = vmul.f32 %v4022_v40, %v2712_v45 }
0x30e1   :  { %v2710_v48 = vpop.permute.xlu0 %2709 }
0x30e2   :  { %2721 = vrot.lane.b32.xlu1 %v2716_v46, %s4244_s3  ;;  %v2715_v52 = vmul.f32 %v4024_v47, %v2710_v48 }
0x30e4   :  { %2719 = vrot.lane.b32.xlu0 %v2715_v52, %s4244_s3 }
0x3154   :  { %v2722_v56 = vpop.permute.xlu1 %2721 }
0x3155   :  { %v2726_v57 = vadd.f32 %v2722_v56, %v2706_v54 }
0x3156   :  { %v2720_v60 = vpop.permute.xlu0 %2719 }
0x3157   :  { %4025 = vtanh.f32 %v2726_v57  ;;  %v2725_v62 = vadd.f32 %v2720_v60, %v2705_v58 }
0x3159   :  { %4027 = vtanh.f32 %v2725_v62 }
0x3161   :  { %v4026_v63 = vpop.eup %4025 }
0x3162   :  { %2733 = vrot.lane.b32.xlu1 %v4026_v63, %s4243_s16  ;;  %v3052_v63 = vld [vmem:[%s4879_s13] sm:$0xff] }
0x3163   :  { %v4028_v2 = vpop.eup %4027 }
0x3164   :  { %2731 = vrot.lane.b32.xlu0 %v4028_v2, %s4243_s16  ;;  %v3053_v2 = vld [vmem:[%s4879_s13 + $0x8] sm:$0xff]  ;;  %s4246_s13 = smov [#allocation17]  }
0x3165   :  { %v3783_v3 = vpack.c.bf16 %v3053_v2, %v3052_v63  ;;  %s3175_s17 = sshll.u32 %s4246_s13, 4  ;;  %s3176_s17 = int_to_ptr.vmem [resolvable:$true] %s3175_s17 }
0x3166   :  { %s4199_s14 = scalar_lea.vmem %s3176_s17, 64  ;;  %p4204_p1 = scmp.lt.s32.totalorder %s3176_s17, %s3176_s17 }
0x3167   :  { %3784 = vmatpush3.bf16.msra.mxu0 %v3783_v3  ;;  %p4200_p0 = scmp.ne.s32.totalorder %s3176_s17, %s4199_s14  ;;  %p4205_p2 = scmp.lt.s32.totalorder %s4199_s14, %s4199_s14 }
0x3168   :  { %3785 = vmatprep.subr.bf16.mxu0 %v4240_v0 }
0x3169   :  { %p4206_p3 = por %p4205_p2, %p4204_p1 }
0x316b   :  { %3787 = vmatpush3.bf16.msra.mxu0 %v3786_v8  ;;  %p4207_p4 = pnand %p4206_p3, %p4200_p0 }
0x31d4   :  { %v2734_v17 = vpop.permute.xlu1 %2733 }
0x31d5   :  { %v2738_v20 = vmul.f32 %v4022_v40, %v2734_v17 }
0x31d6   :  { %v2732_v21 = vpop.permute.xlu0 %2731 }
0x31d7   :  { %v2737_v22 = vmul.f32 %v4024_v47, %v2732_v21  ;;  %v2748_v23 = vrot.slane %v2738_v20, %v4801_v19 }
0x31d9   :  { %v2744_v24 = vrot.slane %v2737_v22, %v4801_v19 }
0x31db   :  { %v2749_v49 = vsel %vm513_vm6, %v2748_v23, %v2744_v24 }
0x31dc   :  { %2750 = vrot.lane.b32.xlu0 %v2749_v49, %s4244_s3 }
0x324e   :  { %v2751_v25 = vpop.permute.xlu0 %2750 }
0x324f   :  { %2753 = vst.msk [vmem:[#allocation2 + $0x1] sm:$0x6] %vm518_vm13, %v2751_v25 }
0x3256   :  { %v2758_v26 = vld [vmem:[#allocation2] sm:$0xf] }
0x3257   :  { %3607 = vmatmul.mubr.msk.f32.vlgmr.msra.gmra.mrb[20].mxu1 %vm240_vm5, %v2758_v26 }
0x3258   :  { %3778 = vmatpush3.bf16.msra.mxu1 %v3771_v11  ;;  %3628 = vmatprep.mubr.msk.f32.mxu1 %vm4241_vm0, %v4242_v1  ;;  %vm3155_vm0 = vcmask 58368  }
0x3259   :  { %3779 = vmatprep.subr.bf16.mxu1 %v4240_v0 }
0x325c   :  { %3781 = vmatpush3.bf16.msra.mxu1 %v3774_v14 }
0x332a   :  { %v2839_v32 = vpop.f32.mrb[20].mxu1 }
0x332b   :  { %v2840_v59 = vadd.f32 %v3242_v31, %v2839_v32  ;;  %v3608_v33 = vpop.f32.mrb[21].mxu1 }
0x332d   :  { %v2913_v7 = vadd.f32 %v2909_v28, %v2840_v59 }
0x332f   :  { %4029 = vtanh.f32 %v2913_v7  ;;  %v3244_v35 = vmul.f32 -1.442695, %v2913_v7 }
0x3331   :  { %4031 = vpow2.f32 %v3244_v35 }
0x3339   :  { %v4030_v27 = vpop.eup %4029 }
0x333a   :  { %2923 = vrot.lane.b32.xlu1 %v4030_v27, %s4243_s16 }
0x333b   :  { %v4032_v51 = vpop.eup %4031 }
0x333c   :  { %v2917_v16 = vadd.f32 1.0, %v4032_v51 }
0x333e   :  { %4033 = vrcp.f32 %v2917_v16 }
0x3348   :  { %v4034_v1 = vpop.eup %4033 }
0x3349   :  { %v2921_v38 = vmul.f32 0.0, %v4034_v1 }
0x33ac   :  { %v2924_v36 = vpop.permute.xlu1 %2923 }
0x33ad   :  { %v2926_v37 = vmul.f32 %v4034_v1, %v2924_v36 }
0x33af   :  { %2928 = vrot.lane.b32.xlu0 %v2926_v37, %s4244_s3 }
0x3421   :  { %v2929_v39 = vpop.permute.xlu0 %2928 }
0x3422   :  { %v2931_v41 = vadd.f32 %v2929_v39, %v2921_v38 }
0x3424   :  { %4035 = vtanh.f32 %v2931_v41  ;;  %v3027_v56 = vrot.slane %v2931_v41, 6 }
0x342e   :  { %v4036_v42 = vpop.eup %4035 }
0x342f   :  { %2934 = vrot.lane.b32.xlu1 %v4036_v42, %s4243_s16 }
0x34a1   :  { %v2935_v34 = vpop.permute.xlu1 %2934 }
0x34a2   :  { %v2937_v5 = vmul.f32 %v4034_v1, %v2935_v34 }
0x34a4   :  { %2939 = vrot.lane.b32.xlu0 %v2937_v5, %s4244_s3 }
0x3516   :  { %v2940_v43 = vpop.permute.xlu0 %2939 }
0x3517   :  { %2942 = vst.msk [vmem:[#allocation3] sm:$0x3] %vm376_vm4, %v2940_v43  ;;  %3629 = vmatmul.mubr.msk.f32.vlgmr.msra.gmra.mrb[22].mxu1 %vm240_vm5, %v2940_v43  ;;  %vm3168_vm4 = vcmask 59393  }
0x35ea   :  { %v3011_v44 = vpop.f32.mrb[22].mxu1 }
0x35eb   :  { %v3016_v10 = vrot.slane %v3011_v44, 6  ;;  %v3630_v40 = vpop.f32.mrb[23].mxu1 }
0x35ed   :  { %v3018_v45 = vadd.f32 %v3016_v10, %v2840_v59 }
0x35ef   :  { %4037 = vtanh.f32 %v3018_v45  ;;  %v3246_v47 = vmul.f32 -1.442695, %v3018_v45 }
0x35f1   :  { %4039 = vpow2.f32 %v3246_v47 }
0x35f9   :  { %v4038_v46 = vpop.eup %4037 }
0x35fa   :  { %3031 = vrot.lane.b32.xlu1 %v4038_v46, %s4243_s16 }
0x35fb   :  { %v4040_v48 = vpop.eup %4039 }
0x35fc   :  { %v3022_v52 = vadd.f32 1.0, %v4040_v48 }
0x35fe   :  { %4041 = vrcp.f32 %v3022_v52 }
0x3608   :  { %v4042_v53 = vpop.eup %4041 }
0x3609   :  { %v3029_v57 = vmul.f32 %v4042_v53, %v3027_v56 }
0x366c   :  { %v3032_v54 = vpop.permute.xlu1 %3031 }
0x366d   :  { %v3034_v55 = vmul.f32 %v4042_v53, %v3032_v54 }
0x366f   :  { %3036 = vrot.lane.b32.xlu0 %v3034_v55, %s4244_s3 }
0x36e1   :  { %v3037_v58 = vpop.permute.xlu0 %3036 }
0x36e2   :  { %v3039_v60 = vadd.f32 %v3037_v58, %v3029_v57 }
0x36e4   :  { %4043 = vtanh.f32 %v3039_v60 }
0x36ee   :  { %v4044_v62 = vpop.eup %4043 }
0x36ef   :  { %3042 = vrot.lane.b32.xlu1 %v4044_v62, %s4243_s16 }
0x3761   :  { %v3043_v9 = vpop.permute.xlu1 %3042 }
0x3762   :  { %v3045_v11 = vmul.f32 %v4042_v53, %v3043_v9 }
0x3764   :  { %3047 = vrot.lane.b32.xlu0 %v3045_v11, %s4244_s3 }
0x37d6   :  { %v3048_v12 = vpop.permute.xlu0 %3047 }
0x37d7   :  { %3050 = vst.msk [vmem:[#allocation3] sm:$0xc] %vm665_vm12, %v3048_v12 }
0x37de   :  { %v3051_v13 = vld [vmem:[#allocation3] sm:$0xf] }
0x37df   :  { %3640 = vmatmul.mubr.msk.f32.vlgmr.msra.gmra.mrb[24].mxu0 %vm240_vm5, %v3051_v13 }
0x38b2   :  { %v3132_v61 = vpop.f32.mrb[24].mxu0 }
0x38b3   :  { %v3133_v18 = vadd.f32 %v3247_v15, %v3132_v61  ;;  %v3641_v14 = vpop.f32.mrb[25].mxu0 }
0x38b5   :  { %v3143_v0 = vrot.slane %v3133_v18, %v4770_v50 }
0x38b7   :  { %v3144_v17 = vcombine.high %v3143_v0, %v3143_v0  ;;  %v3148_v20 = vrot.slane %v3143_v0, %v4781_v29  ;;  %v3160_v22 = vrot.slane %v3143_v0, %v4801_v19 }
0x38b9   :  { %v3152_v21 = vrot.slane %v3144_v17, %v4781_v29  ;;  %v3164_v23 = vrot.slane %v3144_v17, %v4801_v19 }
0x38bb   :  { %v3153_v24 = vsel %vm371_vm3, %v3152_v21, %v3148_v20  ;;  %v3165_v49 = vsel %vm513_vm6, %v3164_v23, %v3160_v22 }
0x38bc   :  { %3156 = vst.msk [vmem:[#allocation17] sm:$0x3] %vm3155_vm0, %v3153_v24 }
0x38bd   :  { %3169 = vst.msk [vmem:[#allocation17 + $0x1] sm:$0x6] %vm3168_vm4, %v3165_v49 }
0x38be   :  { %4210 = shalt.err (!%p4207_p4)
}
0x38bf   :  { %s4884_s7 = sld [smem:[#allocation23_spill]] }
0x38c5   :  { %s4211_s15 = scalar_lea.hbm %s4884_s7, 64 }
0x38c6   :  { %p4212_p5 = scmp.ne.s32.totalorder %s4884_s7, %s4211_s15  ;;  %p4215_p6 = scmp.lt.u32.totalorder %s4211_s15, %s4884_s7 }
0x38c8   :  { %p4217_p7 = pnand %p4215_p6, %p4212_p5 }
0x38ca   :  { %4220 = shalt.err (!%p4217_p7)
}
0x38cb   :  { %s4247_s28 = smov 2  }
0x38cc   :  { %3181 = dma.vmem_to_hbm [thread:$0]  %s3176_s17, 64, %s4884_s7, [#allocation7], %s4244_s3, %s4244_s3, %s4247_s28  }
0x38cd   :  { %4229 = dma.done.wait [#allocation7], 64  }
0x38ce   :  { %4230 = vsyncadd [#allocation7], 4294967232 }
0x38cf   :  { %3185 = vsyncpa [#allocation6], 1 }
0x38d0   :  { %3186 = vsyncpa [#allocation9], 1 }
0x38d1   :  { %3187 = vsyncpa [#allocation12], 1 }
0x38d2   :  { %3188 = vsyncpa [#allocation15], 1 }
0x38d3   :  { %3189 = vsyncpa [#allocation7], 1 }

</bundles_post_ra>
